<compile_context>
chip_gen: v5e
topology: v5e:2x2
jax: 0.10.0
libtpu: 0.0.40
codegen_flags: <defaults>
</compile_context>

<pallas_src>
import functools

import jax
import jax.numpy as jnp
import numpy as np
from jax.experimental import pallas as pl
from jax.experimental.pallas import tpu as pltpu


# ----------------------------------------------------------------------------
# Constant interpolation matrices (PyTorch trilinear, align_corners=False).
# ----------------------------------------------------------------------------
def _upsample_matrix_1d(L: int) -> np.ndarray:
    """(L, 2L) matrix U with out_row = in_row @ U (scale-2, half-pixel, clamped)."""
    U = np.zeros((L, 2 * L), dtype=np.float32)
    for m in range(2 * L):
        k = m // 2
        if m % 2 == 0:
            U[k, m] += 0.75
            U[max(k - 1, 0), m] += 0.25
        else:
            U[k, m] += 0.75
            U[min(k + 1, L - 1), m] += 0.25
    return U


def _depth_blend_matrix(t: int) -> np.ndarray:
    """(2t, t+2) depth-axis blend.  Columns 0..t-1 are the in-tile slices,
    column t the (pre-clamped) previous boundary slice, t+1 the next one."""
    B = np.zeros((2 * t, t + 2), dtype=np.float32)
    for j in range(t):
        B[2 * j, j] += 0.75                      # even output slice 2j
        if j >= 1:
            B[2 * j, j - 1] += 0.25
        else:
            B[2 * j, t] += 0.25                  # prev edge
        B[2 * j + 1, j] += 0.75                  # odd output slice 2j+1
        if j <= t - 2:
            B[2 * j + 1, j + 1] += 0.25
        else:
            B[2 * j + 1, t + 1] += 0.25          # next edge
    return B


# ----------------------------------------------------------------------------
# Fused kernel: per (batch n, depth-tile i) -> 2t upsampled output slices.
# ----------------------------------------------------------------------------
def _upblock_kernel(x_ref, pe_ref, ne_ref, g_ref, m_ref, b_ref, o_ref,
                    *, cin, cout, t, hw):
    # x_ref : (1, Cin, t, HW)        centre depth tile (f32)
    # pe_ref: (1, 1, Cin, HW)        previous boundary slice (edge-clamped)
    # ne_ref: (1, 1, Cin, HW)        next boundary slice     (edge-clamped)
    # g_ref : (Cout*2t, Cin*(t+2))   fused depth-blend x conv-weight (bf16)
    # m_ref : (HW, 4*HW)             kron(U_H, U_W) spatial upsample (bf16)
    # b_ref : (Cout*2t, 1)           conv bias expanded over output rows (f32)
    # o_ref : (1, Cout, 2t, 4*HW)    output tile
    x2d = x_ref[0].reshape(cin * t, hw)                        # tile-aligned (free)
    s = jnp.concatenate([x2d, pe_ref[0, 0], ne_ref[0, 0]], axis=0)
    s = s.astype(jnp.bfloat16)                                 # (Cin*(t+2), HW)

    # depth blend + 1x1x1 conv in one MXU matmul; rows ordered (cout, out_d)
    r = jnp.dot(g_ref[...], s, preferred_element_type=jnp.float32)
    # H/W bilinear upsample as a second MXU matmul, then bias (added once)
    z = jnp.dot(r.astype(jnp.bfloat16), m_ref[...],
                preferred_element_type=jnp.float32)
    z = z + b_ref[...]
    o_ref[...] = z.reshape(1, cout, 2 * t, 4 * hw)             # one lane-dense store


# ----------------------------------------------------------------------------
# Wrapper: UpBlock.forward   x: (N, Cin, D, H, W) -> (N, Cout, 2D, 2H, 2W)
# ----------------------------------------------------------------------------
@jax.jit
def upblock_forward(x, weight, bias):
    N, Cin, D, H, Wd = x.shape
    Cout = weight.shape[0]
    assert weight.shape == (Cout, Cin, 1, 1, 1)
    HW = H * Wd
    # TODO(synk): generalise to D % 8 != 0 / H*W % 128 != 0 (padded blocks).
    assert D % 8 == 0, "depth must be a multiple of 8 for tile-aligned reshapes"
    assert HW % 128 == 0, "H*W must be a multiple of 128 for lane-dense blocks"

    t = 16 if D % 16 == 0 else 8        # depth slices per grid step
    n_t = D // t
    Q = Cout * 2 * t                    # matmul row count (256 at Cout=8, t=16)

    x4 = x.reshape(N, Cin, D, HW)                               # free reshape
    W2 = weight.reshape(Cout, Cin).astype(jnp.float32)

    # Fused depth-blend x conv-weight matrix G: (Q, Cin*(t+2)), bf16.
    Bd = jnp.asarray(_depth_blend_matrix(t))
    G_main = jnp.einsum('oc,qj->oqcj', W2, Bd[:, :t]).reshape(Q, Cin * t)
    G_prev = jnp.einsum('oc,q->oqc', W2, Bd[:, t]).reshape(Q, Cin)
    G_next = jnp.einsum('oc,q->oqc', W2, Bd[:, t + 1]).reshape(Q, Cin)
    G = jnp.concatenate([G_main, G_prev, G_next], axis=1).astype(jnp.bfloat16)

    # Spatial (H, W) bilinear upsample matrix (coefficients exact in bf16).
    M_hw = jnp.asarray(np.kron(_upsample_matrix_1d(H), _upsample_matrix_1d(Wd)),
                       dtype=jnp.bfloat16)

    b_rep = jnp.repeat(bias.astype(jnp.float32), 2 * t).reshape(Q, 1)

    # Edge-clamped depth-halo slices, one per tile: (N, n_t, Cin, HW) each.
    prev_idx = jnp.maximum(jnp.arange(n_t) * t - 1, 0)
    next_idx = jnp.minimum((jnp.arange(n_t) + 1) * t, D - 1)
    prev_src = jnp.transpose(x4[:, :, prev_idx, :], (0, 2, 1, 3))
    next_src = jnp.transpose(x4[:, :, next_idx, :], (0, 2, 1, 3))

    kernel = functools.partial(_upblock_kernel, cin=Cin, cout=Cout, t=t, hw=HW)

    flops = 2 * N * n_t * (Q * (Cin * (t + 2)) * HW + Q * HW * 4 * HW)
    bytes_accessed = ((x4.size + prev_src.size + next_src.size) * 4
                      + N * Cout * 2 * D * 4 * HW * 4
                      + G.size * 2 + M_hw.size * 2 + b_rep.size * 4)

    out4 = pl.pallas_call(
        kernel,
        out_shape=jax.ShapeDtypeStruct((N, Cout, 2 * D, 4 * HW), jnp.float32),
        grid=(N, n_t),
        in_specs=[
            pl.BlockSpec((1, Cin, t, HW), lambda n, i: (n, 0, i, 0)),   # centre tile
            pl.BlockSpec((1, 1, Cin, HW), lambda n, i: (n, i, 0, 0)),   # prev edge slice
            pl.BlockSpec((1, 1, Cin, HW), lambda n, i: (n, i, 0, 0)),   # next edge slice
            pl.BlockSpec((Q, Cin * (t + 2)), lambda n, i: (0, 0)),      # fused G
            pl.BlockSpec((HW, 4 * HW), lambda n, i: (0, 0)),            # kron(U_H, U_W)
            pl.BlockSpec((Q, 1), lambda n, i: (0, 0)),                  # bias
        ],
        out_specs=pl.BlockSpec((1, Cout, 2 * t, 4 * HW),
                               lambda n, i: (n, 0, i, 0)),
        compiler_params=pltpu.CompilerParams(
            dimension_semantics=("parallel", "parallel")),
        cost_estimate=pl.CostEstimate(flops=flops, transcendentals=0,
                                      bytes_accessed=bytes_accessed),
    )(x4, prev_src, next_src, G, M_hw, b_rep)

    return out4.reshape(N, Cout, 2 * D, 2 * H, 2 * Wd)


# ----------------------------------------------------------------------------
# Pure-JAX reference (PyTorch trilinear align_corners=False + 1x1x1 conv).
# ----------------------------------------------------------------------------
def _upsample1d_ref(x, axis):
    L = x.shape[axis]
    out = jnp.arange(2 * L, dtype=jnp.float32)
    src = jnp.clip((out + 0.5) * 0.5 - 0.5, 0.0, None)
    i0 = jnp.clip(jnp.floor(src).astype(jnp.int32), 0, L - 1)
    i1 = jnp.clip(i0 + 1, 0, L - 1)
    lam = src - i0.astype(jnp.float32)
    x0 = jnp.take(x, i0, axis=axis)
    x1 = jnp.take(x, i1, axis=axis)
    shape = [1] * x.ndim
    shape[axis] = 2 * L
    lam = lam.reshape(shape)
    return x0 * (1.0 - lam) + x1 * lam


def _ref_upblock(x, weight, bias):
    y = x
    for ax in (2, 3, 4):
        y = _upsample1d_ref(y, ax)
    Cout, Cin = weight.shape[:2]
    y = jnp.einsum("oc,ncdhw->nodhw", weight.reshape(Cout, Cin), y,
                   precision=jax.lax.Precision.HIGHEST)
    return y + bias.reshape(1, Cout, 1, 1, 1)


if __name__ == "__main__":
    key = jax.random.PRNGKey(0)

    def run_case(k, N, Cin, Cout, D, H, W):
        kx, kw, kb = jax.random.split(k, 3)
        x = jax.random.normal(kx, (N, Cin, D, H, W), jnp.float32)
        weight = 0.1 * jax.random.normal(kw, (Cout, Cin, 1, 1, 1), jnp.float32)
        bias = 0.1 * jax.random.normal(kb, (Cout,), jnp.float32)
        out = jax.block_until_ready(upblock_forward(x, weight, bias))
        ref = jax.block_until_ready(_ref_upblock(x, weight, bias))
        # bf16 matmul operands with f32 accumulation -> loose tolerance.
        np.testing.assert_allclose(np.asarray(out), np.asarray(ref),
                                   rtol=2e-2, atol=2e-2)

    k1, k2 = jax.random.split(key)
    run_case(k1, N=2, Cin=16, Cout=8, D=16, H=8, W=16)   # single depth tile
    run_case(k2, N=1, Cin=16, Cout=8, D=32, H=8, W=16)   # tiled depth (halo path)
    print("KERNEL_OK")
</pallas_src>

<mosaic_0001>
module attributes {stable_mosaic.version = 11 : i64} {
  func.func @_upblock_kernel(%arg0: i32, %arg1: i32, %arg2: memref<1x16x16x128xf32, #tpu.memory_space<vmem>>, %arg3: memref<1x1x16x128xf32, #tpu.memory_space<vmem>>, %arg4: memref<1x1x16x128xf32, #tpu.memory_space<vmem>>, %arg5: memref<256x288xbf16, #tpu.memory_space<vmem>>, %arg6: memref<128x512xbf16, #tpu.memory_space<vmem>>, %arg7: memref<256x1xf32, #tpu.memory_space<vmem>>, %arg8: memref<1x8x32x512xf32, #tpu.memory_space<vmem>>) attributes {dimension_semantics = [#tpu.dimension_semantics<parallel>, #tpu.dimension_semantics<parallel>], iteration_bounds = array<i64: 2, 1>, scalar_prefetch = 0 : i64, scratch_operands = 0 : i64, tpu.core_type = #tpu.core_type<tc>, window_params = [{transform_indices = @transform_0, window_bounds = array<i64: 1, 16, 16, 128>}, {transform_indices = @transform_1, window_bounds = array<i64: 1, 1, 16, 128>}, {transform_indices = @transform_2, window_bounds = array<i64: 1, 1, 16, 128>}, {pipeline_mode = #tpu.pipeline_mode<synchronous>, transform_indices = @transform_3, window_bounds = array<i64: 256, 288>}, {pipeline_mode = #tpu.pipeline_mode<synchronous>, transform_indices = @transform_4, window_bounds = array<i64: 128, 512>}, {pipeline_mode = #tpu.pipeline_mode<synchronous>, transform_indices = @transform_5, window_bounds = array<i64: 256, 1>}, {transform_indices = @transform_6, window_bounds = array<i64: 1, 8, 32, 512>}]} {
    %c0 = arith.constant 0 : index
    %c0_0 = arith.constant 0 : index
    %c0_1 = arith.constant 0 : index
    %c0_2 = arith.constant 0 : index
    %0 = vector.load %arg2[%c0, %c0_0, %c0_1, %c0_2] : memref<1x16x16x128xf32, #tpu.memory_space<vmem>>, vector<1x16x16x128xf32>
    %1 = vector.shape_cast %0 : vector<1x16x16x128xf32> to vector<16x16x128xf32>
    %2 = vector.shape_cast %1 : vector<16x16x128xf32> to vector<256x128xf32>
    %c0_3 = arith.constant 0 : index
    %c0_4 = arith.constant 0 : index
    %c0_5 = arith.constant 0 : index
    %c0_6 = arith.constant 0 : index
    %3 = vector.load %arg3[%c0_3, %c0_4, %c0_5, %c0_6] : memref<1x1x16x128xf32, #tpu.memory_space<vmem>>, vector<1x1x16x128xf32>
    %4 = vector.shape_cast %3 : vector<1x1x16x128xf32> to vector<16x128xf32>
    %c0_7 = arith.constant 0 : index
    %c0_8 = arith.constant 0 : index
    %c0_9 = arith.constant 0 : index
    %c0_10 = arith.constant 0 : index
    %5 = vector.load %arg4[%c0_7, %c0_8, %c0_9, %c0_10] : memref<1x1x16x128xf32, #tpu.memory_space<vmem>>, vector<1x1x16x128xf32>
    %6 = vector.shape_cast %5 : vector<1x1x16x128xf32> to vector<16x128xf32>
    %7 = tpu.concatenate %2, %4, %6 in 0 : vector<256x128xf32>, vector<16x128xf32>, vector<16x128xf32> -> vector<288x128xf32>
    %8 = arith.truncf %7 : vector<288x128xf32> to vector<288x128xbf16>
    %c0_11 = arith.constant 0 : index
    %c0_12 = arith.constant 0 : index
    %9 = vector.load %arg5[%c0_11, %c0_12] : memref<256x288xbf16, #tpu.memory_space<vmem>>, vector<256x288xbf16>
    %cst = arith.constant dense<0.000000e+00> : vector<256x128xf32>
    %10 = tpu.matmul %9, %8, %cst {dimension_numbers = #tpu.dot_dimension_numbers<[1], [0], [0], [1], [0, 0, 1, 1], [], []>} : vector<256x288xbf16>, vector<288x128xbf16>, vector<256x128xf32> -> vector<256x128xf32>
    %11 = arith.truncf %10 : vector<256x128xf32> to vector<256x128xbf16>
    %c0_13 = arith.constant 0 : index
    %c0_14 = arith.constant 0 : index
    %12 = vector.load %arg6[%c0_13, %c0_14] : memref<128x512xbf16, #tpu.memory_space<vmem>>, vector<128x512xbf16>
    %cst_15 = arith.constant dense<0.000000e+00> : vector<256x512xf32>
    %13 = tpu.matmul %11, %12, %cst_15 {dimension_numbers = #tpu.dot_dimension_numbers<[1], [0], [0], [1], [0, 0, 1, 1], [], []>} : vector<256x128xbf16>, vector<128x512xbf16>, vector<256x512xf32> -> vector<256x512xf32>
    %c0_16 = arith.constant 0 : index
    %c0_17 = arith.constant 0 : index
    %14 = vector.load %arg7[%c0_16, %c0_17] : memref<256x1xf32, #tpu.memory_space<vmem>>, vector<256x1xf32>
    %15 = vector.broadcast %14 : vector<256x1xf32> to vector<256x512xf32>
    %16 = arith.addf %13, %15 : vector<256x512xf32>
    %17 = vector.shape_cast %16 : vector<256x512xf32> to vector<1x8x32x512xf32>
    %c0_18 = arith.constant 0 : index
    %c0_19 = arith.constant 0 : index
    %c0_20 = arith.constant 0 : index
    %c0_21 = arith.constant 0 : index
    %18 = vector.load %arg8[%c0_18, %c0_19, %c0_20, %c0_21] : memref<1x8x32x512xf32, #tpu.memory_space<vmem>>, vector<1x8x32x512xf32>
    tpu.vector_store %arg8[%c0_18, %c0_19, %c0_20, %c0_21], %17 {strides = array<i32>} : memref<1x8x32x512xf32, #tpu.memory_space<vmem>>, vector<1x8x32x512xf32>,
    return
  }
  func.func @transform_0(%arg0: i32, %arg1: i32) -> (i32, i32, i32, i32) {
    %c0_i32 = arith.constant 0 : i32
    %c0_i32_0 = arith.constant 0 : i32
    %c0_i32_1 = arith.constant 0 : i32
    return %arg0, %c0_i32, %arg1, %c0_i32_0 : i32, i32, i32, i32
  }
  func.func @transform_1(%arg0: i32, %arg1: i32) -> (i32, i32, i32, i32) {
    %c0_i32 = arith.constant 0 : i32
    %c0_i32_0 = arith.constant 0 : i32
    %c0_i32_1 = arith.constant 0 : i32
    return %arg0, %arg1, %c0_i32, %c0_i32_0 : i32, i32, i32, i32
  }
  func.func @transform_2(%arg0: i32, %arg1: i32) -> (i32, i32, i32, i32) {
    %c0_i32 = arith.constant 0 : i32
    %c0_i32_0 = arith.constant 0 : i32
    %c0_i32_1 = arith.constant 0 : i32
    return %arg0, %arg1, %c0_i32, %c0_i32_0 : i32, i32, i32, i32
  }
  func.func @transform_3(%arg0: i32, %arg1: i32) -> (i32, i32) {
    %c0_i32 = arith.constant 0 : i32
    %c0_i32_0 = arith.constant 0 : i32
    %c0_i32_1 = arith.constant 0 : i32
    return %c0_i32, %c0_i32_0 : i32, i32
  }
  func.func @transform_4(%arg0: i32, %arg1: i32) -> (i32, i32) {
    %c0_i32 = arith.constant 0 : i32
    %c0_i32_0 = arith.constant 0 : i32
    %c0_i32_1 = arith.constant 0 : i32
    return %c0_i32, %c0_i32_0 : i32, i32
  }
  func.func @transform_5(%arg0: i32, %arg1: i32) -> (i32, i32) {
    %c0_i32 = arith.constant 0 : i32
    %c0_i32_0 = arith.constant 0 : i32
    %c0_i32_1 = arith.constant 0 : i32
    return %c0_i32, %c0_i32_0 : i32, i32
  }
  func.func @transform_6(%arg0: i32, %arg1: i32) -> (i32, i32, i32, i32) {
    %c0_i32 = arith.constant 0 : i32
    %c0_i32_0 = arith.constant 0 : i32
    %c0_i32_1 = arith.constant 0 : i32
    return %arg0, %c0_i32, %arg1, %c0_i32_0 : i32, i32, i32, i32
  }
}

</mosaic_0001>

<bundles_post_ra>
// kernel: upblock_forward.1
= control target key start
LH: loop header
LB: loop body
LE: loop exit
PB: predicated region body
PF: predicated region fallthrough
CT: control target
= control target key end

     0   :  { %s2596_s21 = smov 0   ;;  %s2598_s22 = smov 0   ;;  %s3769_s0 = inlined_call_operand.vmem [shape: f32[2,16,16,128], index: 0, kind: input, shape index: {}]   ;;  %s3770_s1 = inlined_call_operand.vmem [shape: f32[2,1,16,128], index: 1, kind: input, shape index: {}]   ;;  %s3771_s2 = inlined_call_operand.vmem [shape: f32[2,1,16,128], index: 2, kind: input, shape index: {}]   ;;  %s3772_s3 = inlined_call_operand.vmem [shape: bf16[256,288], index: 3, kind: input, shape index: {}]   ;;  %s3773_s4 = inlined_call_operand.vmem [shape: bf16[128,512], index: 4, kind: input, shape index: {}]   ;;  %s3774_s5 = inlined_call_operand.vmem [shape: f32[256,1], index: 5, kind: input, shape index: {}]   ;;  %s3775_s6 = inlined_call_operand.vmem [shape: f32[2,8,32,512], index: 6, kind: output, shape index: {}]  }
   0x1   :  { %s2600_s23 = smov 0  }
   0x2 LB: > { %s28_s24 = sadd.s32 1, %s2554_s22  ;;  %p2059_p0 = scmp.ge.s32.totalorder %s2558_s23, 1  ;;  %s2558_s23 = sphi %s2600_s23, %s16_s23   ;;  %s2554_s22 = sphi %s2598_s22, %s3777_s22   ;;  %s2550_s21 = sphi %s2596_s21, %s3776_s21  }
   0x3   : > { %p30_p1 = scmp.ge.s32.totalorder %s28_s24, 2  ;;  %p265_p2 = scmp.lt.s32.totalorder %s2558_s23, 3 }
   0x5   : > { %s3779_s24 = smov (%p30_p1, %s28_s24), 0  ;;  %p266_p3 = pnand %p2059_p0, %p265_p2 }
   0x6   : > { %p323_p4 = scmp.lt.s32.totalorder (!%p266_p3), %s2550_s21, 1 }
   0x7   : > { %269 = sbr.rel (%p266_p3) target bundleno = 634 (0x27a), region = 44 }
   0xc   : > { %s3781_s21 = smov (!%p323_p4, %s2550_s21), 1  ;;  %v2486_v7 = vld [vmem:[%s3773_s4 + $0xe4] sm:$0xf]  ;;  %v2392_v8 = vld [vmem:[%s3773_s4 + $0xf0] sm:$0xf0]  ;;  %vm720_vm0 = vcmask 261120  }
   0xd   : > { %s2406_s25 = sshll.u32 %s3781_s21, 8  ;;  %s2407_s29 = sshll.u32 %s3781_s21, 4  ;;  %v2078_v19 = vld [vmem:[%s3772_s3 + $0x8] sm:$0xf]  ;;  %v2412_v23 = vld [vmem:[%s3772_s3 + $0x10] sm:$0xf0]  ;;  %v2395_v26 = vor.u32 %v2486_v7, %v2392_v8 }
   0xe   : > { %s2620_s28 = scalar_lea.vmem %s3769_s0, %s2406_s25  ;;  %s349_s8 = scalar_lea.vmem %s3771_s2, %s2407_s29  ;;  %v2079_v28 = vor.u32 %v2412_v23, %v2078_v19  ;;  %v2482_v40 = vld [vmem:[%s3773_s4 + $0xc4] sm:$0xf]  ;;  %v2376_v41 = vld [vmem:[%s3773_s4 + $0xd0] sm:$0xf0]  ;;  %v2090_v51 = vld [vmem:[%s3772_s3 + $0x20] sm:$0xf] }
   0xf   : > { %v376_v0 = vld [vmem:[%s2620_s28 + $0x70] sm:$0xff]  ;;  %v377_v1 = vld [vmem:[%s2620_s28 + $0x78] sm:$0xff]  ;;  %v374_v5 = vld [vmem:[%s2620_s28 + $0x60] sm:$0xff]  ;;  %s340_s11 = scalar_lea.vmem %s3770_s1, %s2407_s29  ;;  %v2379_v43 = vor.u32 %v2482_v40, %v2376_v41  ;;  %s2409_s7 = sshll.u32 %s3781_s21, 10 }
  0x10   : > { %v392_v2 = vld [vmem:[%s2620_s28 + $0xf0] sm:$0xff]  ;;  %v405_v3 = vpack.c.bf16 %v377_v1, %v376_v0  ;;  %v393_v4 = vld [vmem:[%s2620_s28 + $0xf8] sm:$0xff]  ;;  %v375_v6 = vld [vmem:[%s2620_s28 + $0x68] sm:$0xff]  ;;  %s3360_s12 = scalar_lea.vmem %s3775_s6, %s2409_s7 }
  0x11   : > { %v2641_v9 = vpack.c.bf16 %v393_v4, %v392_v2  ;;  %v396_v10 = vld [vmem:[%s349_s8] sm:$0xff]  ;;  %v397_v11 = vld [vmem:[%s349_s8 + $0x8] sm:$0xff]  ;;  %v404_v14 = vpack.c.bf16 %v375_v6, %v374_v5  ;;  %v372_v20 = vld [vmem:[%s2620_s28 + $0x50] sm:$0xff] }
  0x12   : > { %v390_v12 = vld [vmem:[%s2620_s28 + $0xe0] sm:$0xff]  ;;  %769 = vmatpush.bf16.msra.mxu0 %v405_v3  ;;  %2490 = vmatpush.bf16.msra.mxu3 %v405_v3  ;;  %v2644_v13 = vpack.c.bf16 %v397_v11, %v396_v10  ;;  %v391_v15 = vld [vmem:[%s2620_s28 + $0xe8] sm:$0xff]  ;;  %v373_v21 = vld [vmem:[%s2620_s28 + $0x58] sm:$0xff] }
  0x13   : > { %v394_v16 = vld [vmem:[%s340_s11] sm:$0xff]  ;;  %v395_v17 = vld [vmem:[%s340_s11 + $0x8] sm:$0xff]  ;;  %858 = vmatpush.bf16.msra.mxu1 %v2641_v9  ;;  %v2648_v18 = vpack.c.bf16 %v391_v15, %v390_v12  ;;  %v388_v24 = vld [vmem:[%s2620_s28 + $0xd0] sm:$0xff]  ;;  %v403_v27 = vpack.c.bf16 %v373_v21, %v372_v20 }
  0x14   : > { %953 = vmatpush.bf16.msra.mxu2 %v2644_v13  ;;  %v2656_v22 = vpack.c.bf16 %v395_v17, %v394_v16  ;;  %v389_v25 = vld [vmem:[%s2620_s28 + $0xd8] sm:$0xff]  ;;  %v370_v30 = vld [vmem:[%s2620_s28 + $0x40] sm:$0xff]  ;;  %v371_v31 = vld [vmem:[%s2620_s28 + $0x48] sm:$0xff] }
  0x15   : > { %v2664_v29 = vpack.c.bf16 %v389_v25, %v388_v24  ;;  %v386_v32 = vld [vmem:[%s2620_s28 + $0xc0] sm:$0xff]  ;;  %v387_v33 = vld [vmem:[%s2620_s28 + $0xc8] sm:$0xff]  ;;  %v402_v34 = vpack.c.bf16 %v371_v31, %v370_v30  ;;  %v368_v36 = vld [vmem:[%s2620_s28 + $0x30] sm:$0xff] }
  0x16   : > { %770 = vmatpush.bf16.msra.mxu0 %v404_v14  ;;  %2491 = vmatpush.bf16.msra.mxu3 %v404_v14  ;;  %v2673_v35 = vpack.c.bf16 %v387_v33, %v386_v32  ;;  %v369_v37 = vld [vmem:[%s2620_s28 + $0x38] sm:$0xff]  ;;  %v384_v38 = vld [vmem:[%s2620_s28 + $0xb0] sm:$0xff]  ;;  %v366_v45 = vld [vmem:[%s2620_s28 + $0x20] sm:$0xff] }
  0x17   : > { %859 = vmatpush.bf16.msra.mxu1 %v2648_v18  ;;  %v385_v39 = vld [vmem:[%s2620_s28 + $0xb8] sm:$0xff]  ;;  %v401_v42 = vpack.c.bf16 %v369_v37, %v368_v36  ;;  %v367_v46 = vld [vmem:[%s2620_s28 + $0x28] sm:$0xff]  ;;  %v382_v47 = vld [vmem:[%s2620_s28 + $0xa0] sm:$0xff] }
  0x18   : > { %954 = vmatpush.bf16.msra.mxu2 %v2656_v22  ;;  %v2686_v44 = vpack.c.bf16 %v385_v39, %v384_v38  ;;  %v383_v48 = vld [vmem:[%s2620_s28 + $0xa8] sm:$0xff]  ;;  %v400_v49 = vpack.c.bf16 %v367_v46, %v366_v45  ;;  %v364_v52 = vld [vmem:[%s2620_s28 + $0x10] sm:$0xff]  ;;  %v365_v53 = vld [vmem:[%s2620_s28 + $0x18] sm:$0xff] }
  0x19   : > { %v2693_v50 = vpack.c.bf16 %v383_v48, %v382_v47  ;;  %v2415_v54 = vld [vmem:[%s3772_s3 + $0x28] sm:$0xf0]  ;;  %v380_v55 = vld [vmem:[%s2620_s28 + $0x90] sm:$0xff]  ;;  %v381_v56 = vld [vmem:[%s2620_s28 + $0x98] sm:$0xff]  ;;  %v399_v57 = vpack.c.bf16 %v365_v53, %v364_v52 }
  0x1a   : > { %771 = vmatpush.bf16.msra.mxu0 %v403_v27  ;;  %2492 = vmatpush.bf16.msra.mxu3 %v403_v27  ;;  %v2091_v58 = vor.u32 %v2415_v54, %v2090_v51  ;;  %v2706_v59 = vpack.c.bf16 %v381_v56, %v380_v55  ;;  %v362_v60 = vld [vmem:[%s2620_s28] sm:$0xff]  ;;  %v363_v61 = vld [vmem:[%s2620_s28 + $0x8] sm:$0xff]  ;;  %v2489_v1 = vld [vmem:[%s3773_s4 + $0xf4] sm:$0xf0] }
  0x1b   : > { %2260 = vmatmul.msk.bf16.vlgmr.msra.gmra.mxu2 %vm720_vm0, %v2079_v28  ;;  %860 = vmatpush.bf16.msra.mxu1 %v2664_v29  ;;  %v378_v62 = vld [vmem:[%s2620_s28 + $0x80] sm:$0xff]  ;;  %v379_v63 = vld [vmem:[%s2620_s28 + $0x88] sm:$0xff]  ;;  %v2400_v4 = vld [vmem:[%s3773_s4 + $0xf8] sm:$0xf0]  ;;  %v398_v5 = vpack.c.bf16 %v363_v61, %v362_v60 }
  0x1c   : > { %1525 = vmatpush.bf16.msrb.mxu2 %v2395_v26  ;;  %v2398_v0 = vld [vmem:[%s3773_s4 + $0xe8] sm:$0xf]  ;;  %v2070_v2 = vld [vmem:[%s3772_s3] sm:$0xf]  ;;  %v2487_v3 = vld [vmem:[%s3773_s4 + $0xec] sm:$0xf]  ;;  %v2738_v10 = vpack.c.bf16 %v379_v63, %v378_v62 }
  0x1d   : > { %v2411_v6 = vld [vmem:[%s3772_s3 + $0x8] sm:$0xf0]  ;;  %v2214_v7 = vld [vmem:[%s3772_s3 + $0x120] sm:$0xf]  ;;  %v2410_v11 = vld [vmem:[%s3772_s3 + $0x4] sm:$0xf]  ;;  %v2399_v14 = vor.u32 %v2489_v1, %v2398_v0  ;;  %v2403_v15 = vor.u32 %v2487_v3, %v2400_v4 }
  0x1e   : > { %772 = vmatpush.bf16.msra.mxu0 %v402_v34  ;;  %2493 = vmatpush.bf16.msra.mxu3 %v402_v34  ;;  %v2447_v8 = vld [vmem:[%s3772_s3 + $0x128] sm:$0xf0]  ;;  %v2072_v12 = vld [vmem:[%s3772_s3 + $0xc] sm:$0xf0]  ;;  %v2071_v16 = vor.u32 %v2411_v6, %v2070_v2  ;;  %v2478_v20 = vld [vmem:[%s3773_s4 + $0xa4] sm:$0xf] }
  0x1f   : > { %861 = vmatpush.bf16.msra.mxu1 %v2673_v35  ;;  %v2215_v17 = vor.u32 %v2447_v8, %v2214_v7  ;;  %v2075_v19 = vor.u32 %v2410_v11, %v2072_v12  ;;  %v2360_v21 = vld [vmem:[%s3773_s4 + $0xb0] sm:$0xf0]  ;;  %v2382_v23 = vld [vmem:[%s3773_s4 + $0xc8] sm:$0xf]  ;;  %v2483_v25 = vld [vmem:[%s3773_s4 + $0xcc] sm:$0xf] }
  0x20   : > { %1526 = vmatpush.bf16.msrb.mxu2 %v2379_v43  ;;  %v2363_v24 = vor.u32 %v2478_v20, %v2360_v21  ;;  %v2384_v26 = vld [vmem:[%s3773_s4 + $0xd8] sm:$0xf0]  ;;  %v2102_v27 = vld [vmem:[%s3772_s3 + $0x38] sm:$0xf]  ;;  %v2418_v28 = vld [vmem:[%s3772_s3 + $0x40] sm:$0xf0] }
  0x21   : > { %v2387_v31 = vor.u32 %v2483_v25, %v2384_v26  ;;  %v2103_v32 = vor.u32 %v2418_v28, %v2102_v27  ;;  %v2082_v33 = vld [vmem:[%s3772_s3 + $0x18] sm:$0xf]  ;;  %v2414_v34 = vld [vmem:[%s3772_s3 + $0x20] sm:$0xf0]  ;;  %v2084_v37 = vld [vmem:[%s3772_s3 + $0x24] sm:$0xf0] }
  0x22   : > { %773 = vmatpush.bf16.msra.mxu0 %v401_v42  ;;  %2494 = vmatpush.bf16.msra.mxu3 %v401_v42  ;;  %v2450_v36 = vld [vmem:[%s3772_s3 + $0x140] sm:$0xf0]  ;;  %v2083_v38 = vor.u32 %v2414_v34, %v2082_v33  ;;  %v2114_v41 = vld [vmem:[%s3772_s3 + $0x50] sm:$0xf]  ;;  %v2421_v42 = vld [vmem:[%s3772_s3 + $0x58] sm:$0xf0] }
  0x23   : > { %862 = vmatpush.bf16.msra.mxu1 %v2686_v44  ;;  %v2115_v43 = vor.u32 %v2421_v42, %v2114_v41  ;;  %v2238_v45 = vld [vmem:[%s3772_s3 + $0x150] sm:$0xf]  ;;  %v2453_v46 = vld [vmem:[%s3772_s3 + $0x158] sm:$0xf0]  ;;  %v2416_v47 = vld [vmem:[%s3772_s3 + $0x34] sm:$0xf] }
  0x24   : > { %1527 = vmatpush.bf16.msrb.mxu2 %v2363_v24  ;;  %v2096_v48 = vld [vmem:[%s3772_s3 + $0x3c] sm:$0xf0]  ;;  %v2366_v51 = vld [vmem:[%s3773_s4 + $0xa8] sm:$0xf]  ;;  %v2481_v53 = vld [vmem:[%s3773_s4 + $0xb4] sm:$0xf0] }
  0x25   : > { %v2479_v54 = vld [vmem:[%s3773_s4 + $0xac] sm:$0xf]  ;;  %v2368_v55 = vld [vmem:[%s3773_s4 + $0xb8] sm:$0xf0]  ;;  %v2099_v60 = vor.u32 %v2416_v47, %v2096_v48  ;;  %v2126_v61 = vld [vmem:[%s3772_s3 + $0x68] sm:$0xf] }
  0x26   : > { %774 = vmatpush.bf16.msra.mxu0 %v400_v49  ;;  %2495 = vmatpush.bf16.msra.mxu3 %v400_v49  ;;  %v2474_v49 = vld [vmem:[%s3773_s4 + $0x84] sm:$0xf]  ;;  %v2424_v62 = vld [vmem:[%s3772_s3 + $0x70] sm:$0xf0]  ;;  %v2419_v2 = vld [vmem:[%s3772_s3 + $0x4c] sm:$0xf] }
  0x27   : > { %863 = vmatpush.bf16.msra.mxu1 %v2693_v50  ;;  %v2127_v63 = vor.u32 %v2424_v62, %v2126_v61  ;;  %v2420_v0 = vld [vmem:[%s3772_s3 + $0x50] sm:$0xf0]  ;;  %v2108_v3 = vld [vmem:[%s3772_s3 + $0x54] sm:$0xf0]  ;;  %v2350_v7 = vld [vmem:[%s3773_s4 + $0x88] sm:$0xf] }
  0x28   : > { %v2456_v1 = vld [vmem:[%s3772_s3 + $0x170] sm:$0xf0]  ;;  %v2111_v6 = vor.u32 %v2419_v2, %v2108_v3  ;;  %v2477_v8 = vld [vmem:[%s3773_s4 + $0x94] sm:$0xf0]  ;;  %v2352_v12 = vld [vmem:[%s3773_s4 + $0x98] sm:$0xf0] }
  0x29   : > { %v2351_v11 = vor.u32 %v2477_v8, %v2350_v7  ;;  %v2423_v20 = vld [vmem:[%s3772_s3 + $0x68] sm:$0xf0]  ;;  %v2422_v21 = vld [vmem:[%s3772_s3 + $0x64] sm:$0xf]  ;;  %v2216_v24 = vld [vmem:[%s3772_s3 + $0x12c] sm:$0xf0] }
  0x2a   : > { %775 = vmatpush.bf16.msra.mxu0 %v399_v57  ;;  %2496 = vmatpush.bf16.msra.mxu3 %v399_v57  ;;  %v2239_v57 = vor.u32 %v2453_v46, %v2238_v45  ;;  %v2470_v25 = vld [vmem:[%s3773_s4 + $0x64] sm:$0xf]  ;;  %v2328_v26 = vld [vmem:[%s3773_s4 + $0x70] sm:$0xf0]  ;;  %v2336_v46 = vld [vmem:[%s3773_s4 + $0x78] sm:$0xf0] }
  0x2b   : > { %2261 = vmatmul.msk.bf16.gmra.mxu2 %vm720_vm0, %v2091_v58  ;;  %864 = vmatpush.bf16.msra.mxu1 %v2706_v59  ;;  %v2367_v58 = vor.u32 %v2481_v53, %v2366_v51  ;;  %v2331_v27 = vor.u32 %v2470_v25, %v2328_v26  ;;  %v2430_v33 = vld [vmem:[%s3772_s3 + $0xa0] sm:$0xf0]  ;;  %v2162_v48 = vld [vmem:[%s3772_s3 + $0xb0] sm:$0xf]  ;;  %v2312_v51 = vld [vmem:[%s3773_s4 + $0x50] sm:$0xf0] }
  0x2c   : > { %v2374_v2 = vld [vmem:[%s3773_s4 + $0xc0] sm:$0xf]  ;;  %v2484_v3 = vld [vmem:[%s3773_s4 + $0xcc] sm:$0xf0] }
  0x2d   : > { %v2358_v7 = vld [vmem:[%s3773_s4 + $0xa0] sm:$0xf]  ;;  %v2480_v8 = vld [vmem:[%s3773_s4 + $0xac] sm:$0xf0] }
  0x2e   : > { %776 = vmatpush.bf16.msra.mxu0 %v398_v5  ;;  %2497 = vmatpush.bf16.msra.mxu3 %v398_v5  ;;  %v2342_v25 = vld [vmem:[%s3773_s4 + $0x80] sm:$0xf]  ;;  %v2476_v26 = vld [vmem:[%s3773_s4 + $0x8c] sm:$0xf0] }
  0x2f   : > { %865 = vmatpush.bf16.msra.mxu1 %v2738_v10 }
  0x31   : > { %777 = vmatmul.bf16.vlgmr.msra.gmra.mxu0 %v2071_v16  ;;  %837 = vmatmul.bf16.vlgmr.msra.gmra.mxu3 %v2215_v17 }
  0x32   : > { %1614 = vmatpush.bf16.msrb.mxu0 %v2399_v14  ;;  %2498 = vmatpush.bf16.msrb.mxu3 %v2641_v9  ;;  %v2485_v9 = vld [vmem:[%s3773_s4 + $0xd4] sm:$0xf0]  ;;  %v2138_v14 = vld [vmem:[%s3772_s3 + $0x80] sm:$0xf] }
  0x33   : > { %1703 = vmatpush.bf16.msrb.mxu1 %v2403_v15  ;;  %v2383_v30 = vor.u32 %v2485_v9, %v2382_v23  ;;  %v2427_v15 = vld [vmem:[%s3772_s3 + $0x88] sm:$0xf0]  ;;  %v2446_v23 = vld [vmem:[%s3772_s3 + $0x124] sm:$0xf]  ;;  %v2120_v9 = vld [vmem:[%s3772_s3 + $0x6c] sm:$0xf0] }
  0x34   : > { %866 = vmatmul.bf16.vlgmr.msra.gmra.mxu1 %v2075_v19  ;;  %v2139_v17 = vor.u32 %v2427_v15, %v2138_v14  ;;  %v2118_v19 = vld [vmem:[%s3772_s3 + $0x60] sm:$0xf]  ;;  %v2359_v14 = vor.u32 %v2480_v8, %v2358_v7  ;;  %v2431_v15 = vld [vmem:[%s3772_s3 + $0xac] sm:$0xf]  ;;  %v2178_v8 = vld [vmem:[%s3772_s3 + $0xd8] sm:$0xf] }
  0x35   : > { %v2119_v28 = vor.u32 %v2423_v20, %v2118_v19  ;;  %v2469_v19 = vld [vmem:[%s3773_s4 + $0x54] sm:$0xf0]  ;;  %v2467_v20 = vld [vmem:[%s3773_s4 + $0x4c] sm:$0xf] }
  0x36   : > { %2499 = vmatpush.bf16.msrb.mxu3 %v2648_v18  ;;  %1615 = vmatpush.bf16.msrb.mxu0 %v2383_v30  ;;  %v2226_v18 = vld [vmem:[%s3772_s3 + $0x138] sm:$0xf]  ;;  %v2219_v30 = vor.u32 %v2446_v23, %v2216_v24 }
  0x37   : > { %1704 = vmatpush.bf16.msrb.mxu1 %v2387_v31  ;;  %v2227_v39 = vor.u32 %v2450_v36, %v2226_v18  ;;  %v2123_v31 = vor.u32 %v2422_v21, %v2120_v9  ;;  %v2130_v18 = vld [vmem:[%s3772_s3 + $0x78] sm:$0xf]  ;;  %v2426_v36 = vld [vmem:[%s3772_s3 + $0x80] sm:$0xf0]  ;;  %v2320_v9 = vld [vmem:[%s3773_s4 + $0x58] sm:$0xf0] }
  0x3a   : > { %2500 = vmatpush.bf16.msrb.mxu3 %v2664_v29  ;;  %v2413_v29 = vld [vmem:[%s3772_s3 + $0x1c] sm:$0xf]  ;;  %1616 = vmatpush.bf16.msrb.mxu0 %v2367_v58  ;;  %v2428_v58 = vld [vmem:[%s3772_s3 + $0x94] sm:$0xf] }
  0x3b   : > { %2262 = vmatmul.msk.bf16.gmra.mxu2 %vm720_vm0, %v2103_v32  ;;  %v2087_v40 = vor.u32 %v2413_v29, %v2084_v37  ;;  %v2150_v32 = vld [vmem:[%s3772_s3 + $0x98] sm:$0xf]  ;;  %v2449_v29 = vld [vmem:[%s3772_s3 + $0x13c] sm:$0xf]  ;;  %v2228_v37 = vld [vmem:[%s3772_s3 + $0x144] sm:$0xf0] }
  0x3c   : > { %v2151_v34 = vor.u32 %v2430_v33, %v2150_v32  ;;  %v2231_v41 = vor.u32 %v2449_v29, %v2228_v37  ;;  %v2462_v32 = vld [vmem:[%s3773_s4 + $0x24] sm:$0xf]  ;;  %v2296_v33 = vld [vmem:[%s3773_s4 + $0x30] sm:$0xf0]  ;;  %v2186_v29 = vld [vmem:[%s3772_s3 + $0xe0] sm:$0xf] }
  0x3d   : > { %v2439_v37 = vld [vmem:[%s3772_s3 + $0xe8] sm:$0xf0] }
  0x3e   : > { %2501 = vmatpush.bf16.msrb.mxu3 %v2673_v35  ;;  %v2094_v35 = vld [vmem:[%s3772_s3 + $0x30] sm:$0xf]  ;;  %1617 = vmatpush.bf16.msrb.mxu0 %v2351_v11  ;;  %v2455_v11 = vld [vmem:[%s3772_s3 + $0x16c] sm:$0xf] }
  0x41   : > { %782 = vmatmul.bf16.gmra.mxu0 %v2083_v38  ;;  %842 = vmatmul.bf16.gmra.mxu3 %v2227_v39  ;;  %v2425_v38 = vld [vmem:[%s3772_s3 + $0x7c] sm:$0xf]  ;;  %v2132_v39 = vld [vmem:[%s3772_s3 + $0x84] sm:$0xf0] }
  0x42   : > { %2502 = vmatpush.bf16.msrb.mxu3 %v2686_v44  ;;  %v2417_v44 = vld [vmem:[%s3772_s3 + $0x38] sm:$0xf0]  ;;  %v2135_v42 = vor.u32 %v2425_v38, %v2132_v39  ;;  %v2310_v39 = vld [vmem:[%s3773_s4 + $0x40] sm:$0xf] }
  0x43   : > { %v2095_v56 = vor.u32 %v2417_v44, %v2094_v35  ;;  %v2473_v35 = vld [vmem:[%s3773_s4 + $0x74] sm:$0xf0]  ;;  %v2471_v44 = vld [vmem:[%s3773_s4 + $0x6c] sm:$0xf] }
  0x44   : > { %871 = vmatmul.bf16.gmra.mxu1 %v2087_v40  ;;  %v2131_v40 = vor.u32 %v2426_v36, %v2130_v18  ;;  %v2339_v47 = vor.u32 %v2471_v44, %v2336_v46  ;;  %v2299_v18 = vor.u32 %v2462_v32, %v2296_v33  ;;  %v2472_v36 = vld [vmem:[%s3773_s4 + $0x6c] sm:$0xf0]  ;;  %v2294_v44 = vld [vmem:[%s3773_s4 + $0x20] sm:$0xf]  ;;  %v2435_v46 = vld [vmem:[%s3772_s3 + $0xc8] sm:$0xf0] }
  0x45   : > { %v2210_v32 = vld [vmem:[%s3772_s3 + $0x110] sm:$0xf]  ;;  %v2445_v33 = vld [vmem:[%s3772_s3 + $0x118] sm:$0xf0] }
  0x46   : > { %2503 = vmatpush.bf16.msrb.mxu3 %v2693_v50  ;;  %v2344_v50 = vld [vmem:[%s3773_s4 + $0x90] sm:$0xf0] }
  0x47   : > { %v2347_v52 = vor.u32 %v2474_v49, %v2344_v50  ;;  %v2433_v49 = vld [vmem:[%s3772_s3 + $0xb8] sm:$0xf0]  ;;  %v2466_v50 = vld [vmem:[%s3773_s4 + $0x44] sm:$0xf] }
  0x48   : > { %v2315_v53 = vor.u32 %v2466_v50, %v2312_v51  ;;  %v2434_v50 = vld [vmem:[%s3772_s3 + $0xc4] sm:$0xf]  ;;  %v2168_v51 = vld [vmem:[%s3772_s3 + $0xcc] sm:$0xf0] }
  0x49   : > { %1528 = vmatpush.bf16.msrb.mxu2 %v2347_v52  ;;  %v2163_v52 = vor.u32 %v2433_v49, %v2162_v48  ;;  %v2454_v48 = vld [vmem:[%s3772_s3 + $0x160] sm:$0xf0] }
  0x4a   : > { %2504 = vmatpush.bf16.msrb.mxu3 %v2706_v59  ;;  %v2371_v59 = vor.u32 %v2479_v54, %v2368_v55  ;;  %v2142_v54 = vld [vmem:[%s3772_s3 + $0x90] sm:$0xf]  ;;  %v2429_v55 = vld [vmem:[%s3772_s3 + $0x98] sm:$0xf0] }
  0x4b   : > { %2263 = vmatmul.msk.bf16.gmra.mxu2 %vm720_vm0, %v2115_v43  ;;  %v2334_v43 = vld [vmem:[%s3773_s4 + $0x68] sm:$0xf] }
  0x4c   : > { %1705 = vmatpush.bf16.msrb.mxu1 %v2371_v59  ;;  %v2335_v45 = vor.u32 %v2473_v35, %v2334_v43  ;;  %v2144_v59 = vld [vmem:[%s3772_s3 + $0x9c] sm:$0xf0]  ;;  %v2187_v43 = vor.u32 %v2439_v37, %v2186_v29  ;;  %v2211_v37 = vor.u32 %v2445_v33, %v2210_v32 }
  0x4d   : > { %1529 = vmatpush.bf16.msrb.mxu2 %v2331_v27  ;;  %v2147_v62 = vor.u32 %v2428_v58, %v2144_v59  ;;  %v2166_v35 = vld [vmem:[%s3772_s3 + $0xc0] sm:$0xf]  ;;  %v2171_v58 = vor.u32 %v2434_v50, %v2168_v51  ;;  %v2288_v51 = vld [vmem:[%s3773_s4 + $0x18] sm:$0xf0] }
  0x4e   : > { %2505 = vmatpush.bf16.msrb.mxu3 %v2738_v10  ;;  %v2475_v10 = vld [vmem:[%s3773_s4 + $0x8c] sm:$0xf]  ;;  %1618 = vmatpush.bf16.msrb.mxu0 %v2335_v45  ;;  %v2464_v45 = vld [vmem:[%s3773_s4 + $0x2c] sm:$0xf0] }
  0x4f   : > { %v2355_v16 = vor.u32 %v2475_v10, %v2352_v12  ;;  %v2432_v10 = vld [vmem:[%s3772_s3 + $0xb0] sm:$0xf0]  ;;  %v2252_v12 = vld [vmem:[%s3772_s3 + $0x174] sm:$0xf0]  ;;  %v2295_v49 = vor.u32 %v2464_v45, %v2294_v44  ;;  %v1085_v44 = vld [vmem:[%s3774_s5 + $0x8] sm:$0xff] }
  0x50   : > { %v2255_v23 = vor.u32 %v2455_v11, %v2252_v12  ;;  %v2258_v11 = vld [vmem:[%s3772_s3 + $0x170] sm:$0xf]  ;;  %v2457_v12 = vld [vmem:[%s3772_s3 + $0x178] sm:$0xf0] }
  0x51   : > { %787 = vmatmul.bf16.gmra.mxu0 %v2095_v56  ;;  %847 = vmatmul.bf16.gmra.mxu3 %v2239_v57  ;;  %v2452_v56 = vld [vmem:[%s3772_s3 + $0x154] sm:$0xf]  ;;  %v2240_v57 = vld [vmem:[%s3772_s3 + $0x15c] sm:$0xf0] }
  0x52   : > { %2506 = vmatpush.bf16.msra.mxu3 %v2644_v13  ;;  %v2106_v13 = vld [vmem:[%s3772_s3 + $0x48] sm:$0xf]  ;;  %1706 = vmatpush.bf16.msrb.mxu1 %v2355_v16  ;;  %v2243_v61 = vor.u32 %v2452_v56, %v2240_v57  ;;  %v2156_v16 = vld [vmem:[%s3772_s3 + $0xb4] sm:$0xf0] }
  0x53   : > { %v2107_v4 = vor.u32 %v2420_v0, %v2106_v13  ;;  %1530 = vmatpush.bf16.msrb.mxu2 %v2315_v53  ;;  %v2488_v13 = vld [vmem:[%s3773_s4 + $0xec] sm:$0xf0] }
  0x54   : > { %876 = vmatmul.bf16.gmra.mxu1 %v2099_v60  ;;  %v2143_v60 = vor.u32 %v2429_v55, %v2142_v54  ;;  %v2278_v54 = vld [vmem:[%s3773_s4] sm:$0xf]  ;;  %v2460_v55 = vld [vmem:[%s3773_s4 + $0xc] sm:$0xf0] }
  0x55   : > { %v2279_v59 = vor.u32 %v2460_v55, %v2278_v54 }
  0x56   : > { %2507 = vmatpush.bf16.msra.mxu3 %v2656_v22  ;;  %v2250_v22 = vld [vmem:[%s3772_s3 + $0x168] sm:$0xf]  ;;  %1707 = vmatpush.bf16.msrb.mxu1 %v2339_v47  ;;  %v2246_v47 = vld [vmem:[%s3772_s3 + $0x158] sm:$0xf] }
  0x57   : > { %v2251_v5 = vor.u32 %v2456_v1, %v2250_v22  ;;  %v2174_v22 = vld [vmem:[%s3772_s3 + $0xc8] sm:$0xf]  ;;  %v2436_v1 = vld [vmem:[%s3772_s3 + $0xd0] sm:$0xf0]  ;;  %1531 = vmatpush.bf16.msrb.mxu2 %v2299_v18  ;;  %v2247_v53 = vor.u32 %v2454_v48, %v2246_v47  ;;  %v2459_v47 = vld [vmem:[%s3773_s4 + $0xc] sm:$0xf] }
  0x58   : > { %v2291_v55 = vor.u32 %v2459_v47, %v2288_v51  ;;  %v1088_v47 = vld [vmem:[%s3774_s5 + $0x20] sm:$0xff] }
  0x5b   : > { %2264 = vmatmul.msk.bf16.gmra.mxu2 %vm720_vm0, %v2127_v63  ;;  %v2390_v63 = vld [vmem:[%s3773_s4 + $0xe0] sm:$0xf] }
  0x5c   : > { %v2391_v0 = vor.u32 %v2488_v13, %v2390_v63  ;;  %v2463_v63 = vld [vmem:[%s3773_s4 + $0x2c] sm:$0xf] }
  0x61   : > { %792 = vmatmul.bf16.gmra.mxu0 %v2107_v4  ;;  %852 = vmatmul.bf16.gmra.mxu3 %v2251_v5  ;;  %v2375_v4 = vor.u32 %v2484_v3, %v2374_v2  ;;  %v2175_v5 = vor.u32 %v2436_v1, %v2174_v22  ;;  %v2198_v1 = vld [vmem:[%s3772_s3 + $0xf8] sm:$0xf]  ;;  %v2442_v2 = vld [vmem:[%s3772_s3 + $0x100] sm:$0xf0] }
  0x62   : > { %v2199_v7 = vor.u32 %v2442_v2, %v2198_v1 }
  0x64   : > { %881 = vmatmul.bf16.gmra.mxu1 %v2111_v6  ;;  %v2154_v6 = vld [vmem:[%s3772_s3 + $0xa8] sm:$0xf] }
  0x65   : > { %v2155_v21 = vor.u32 %v2432_v10, %v2154_v6  ;;  %v2438_v10 = vld [vmem:[%s3772_s3 + $0xe0] sm:$0xf0] }
  0x6b   : > { %2265 = vmatmul.msk.bf16.gmra.mxu2 %vm720_vm0, %v2139_v17  ;;  %v2318_v17 = vld [vmem:[%s3773_s4 + $0x48] sm:$0xf] }
  0x6c   : > { %v2319_v24 = vor.u32 %v2469_v19, %v2318_v17  ;;  %v2179_v17 = vor.u32 %v2438_v10, %v2178_v8  ;;  %v2259_v19 = vor.u32 %v2457_v12, %v2258_v11  ;;  %v2204_v8 = vld [vmem:[%s3772_s3 + $0x114] sm:$0xf0] }
  0x6d   : > { %v1087_v10 = vld [vmem:[%s3774_s5 + $0x18] sm:$0xff] }
  0x6e   : > { %1619 = vmatpush.bf16.msrb.mxu0 %v2319_v24  ;;  %v2458_v24 = vld [vmem:[%s3773_s4 + $0x4] sm:$0xf] }
  0x71   : > { %797 = vmatmul.bf16.gmra.mxu0 %v2119_v28  ;;  %926 = vmatmul.bf16.vlgmr.msrb.gmra.mxu3 %v2219_v30  ;;  %v2159_v28 = vor.u32 %v2431_v15, %v2156_v16  ;;  %v2323_v30 = vor.u32 %v2467_v20, %v2320_v9  ;;  %v2180_v15 = vld [vmem:[%s3772_s3 + $0xe4] sm:$0xf0]  ;;  %v2280_v9 = vld [vmem:[%s3773_s4 + $0x10] sm:$0xf0] }
  0x72   : > { %1436 = vmatpush.bf16.msrb.mxu3 %v2391_v0  ;;  %v2304_v0 = vld [vmem:[%s3773_s4 + $0x38] sm:$0xf0] }
  0x73   : > { %1708 = vmatpush.bf16.msrb.mxu1 %v2323_v30  ;;  %v2307_v3 = vor.u32 %v2463_v63, %v2304_v0  ;;  %v2560_v30 = vmov 0  }
  0x74   : > { %886 = vmatmul.bf16.gmra.mxu1 %v2123_v31  ;;  %v2343_v31 = vor.u32 %v2476_v26, %v2342_v25  ;;  %v2283_v26 = vor.u32 %v2458_v24, %v2280_v9  ;;  %2533 = vset.pattern.permute.xlu0 %v2560_v30  ;;  %v2234_v24 = vld [vmem:[%s3772_s3 + $0x140] sm:$0xf] }
  0x75   : > { %2534 = vset.pattern.permute.xlu1 %v2560_v30  ;;  %2535 = vset.pattern.permute.xlu2 %v2560_v30 }
  0x76   : > { %1437 = vmatpush.bf16.msrb.mxu3 %v2375_v4  ;;  %1532 = vmatpush.bf16.msrb.mxu2 %v2283_v26 }
  0x77   : > { %1709 = vmatpush.bf16.msrb.mxu1 %v2307_v3  ;;  %v2202_v3 = vld [vmem:[%s3772_s3 + $0x108] sm:$0xf]  ;;  %1138 = vperm.xlu2 %2535, %v1088_v47  }
  0x7a   : > { %1438 = vmatpush.bf16.msrb.mxu3 %v2359_v14  ;;  %v2437_v14 = vld [vmem:[%s3772_s3 + $0xdc] sm:$0xf] }
  0x7b   : > { %2266 = vmatmul.msk.bf16.gmra.mxu2 %vm720_vm0, %v2151_v34  ;;  %v2326_v34 = vld [vmem:[%s3773_s4 + $0x60] sm:$0xf]  ;;  %1710 = vmatpush.bf16.msrb.mxu1 %v2291_v55 }
  0x7c   : > { %v2327_v38 = vor.u32 %v2472_v36, %v2326_v34 }
  0x7e   : > { %1439 = vmatpush.bf16.msrb.mxu3 %v2343_v31 }
  0x81   : > { %802 = vmatmul.bf16.gmra.mxu0 %v2131_v40  ;;  %931 = vmatmul.bf16.gmra.mxu3 %v2231_v41  ;;  %v2468_v40 = vld [vmem:[%s3773_s4 + $0x4c] sm:$0xf0] }
  0x82   : > { %1440 = vmatpush.bf16.msrb.mxu3 %v2327_v38 }
  0x84   : > { %891 = vmatmul.bf16.gmra.mxu1 %v2135_v42  ;;  %v2311_v42 = vor.u32 %v2468_v40, %v2310_v39  ;;  %v2190_v39 = vld [vmem:[%s3772_s3 + $0xf0] sm:$0xf]  ;;  %v2441_v40 = vld [vmem:[%s3772_s3 + $0xf8] sm:$0xf0] }
  0x86   : > { %1441 = vmatpush.bf16.msrb.mxu3 %v2311_v42 }
  0x8a   : > { %1442 = vmatpush.bf16.msrb.mxu3 %v2295_v49  ;;  %v2191_v49 = vor.u32 %v2441_v40, %v2190_v39 }
  0x8b   : > { %2267 = vmatmul.msk.bf16.gmra.mxu2 %vm720_vm0, %v2163_v52  ;;  %v2167_v52 = vor.u32 %v2435_v46, %v2166_v35  ;;  %v2192_v35 = vld [vmem:[%s3772_s3 + $0xfc] sm:$0xf0]  ;;  %v2461_v46 = vld [vmem:[%s3773_s4 + $0x14] sm:$0xf0] }
  0x8e   : > { %1443 = vmatpush.bf16.msrb.mxu3 %v2279_v59 }
  0x91   : > { %807 = vmatmul.bf16.gmra.mxu0 %v2143_v60  ;;  %936 = vmatmul.bf16.gmra.mxu3 %v2243_v61  ;;  %v2302_v61 = vld [vmem:[%s3773_s4 + $0x28] sm:$0xf] }
  0x94   : > { %896 = vmatmul.bf16.gmra.mxu1 %v2147_v62  ;;  %v2465_v62 = vld [vmem:[%s3773_s4 + $0x34] sm:$0xf0] }
  0x95   : > { %v2303_v13 = vor.u32 %v2465_v62, %v2302_v61  ;;  %v2448_v61 = vld [vmem:[%s3772_s3 + $0x130] sm:$0xf0] }
  0x97   : > { %1620 = vmatpush.bf16.msrb.mxu0 %v2303_v13 }
  0x9b   : > { %2268 = vmatmul.msk.bf16.gmra.mxu2 %vm720_vm0, %v2175_v5 }
  0x9e   : > { %v3040_v27 = vpop.f32.mrf.mxu2 }
  0xa1   : > { %812 = vmatmul.bf16.gmra.mxu0 %v2155_v21  ;;  %941 = vmatmul.bf16.gmra.mxu3 %v2255_v23  ;;  %v2183_v23 = vor.u32 %v2437_v14, %v2180_v15 }
  0xa4   : > { %901 = vmatmul.bf16.gmra.mxu1 %v2159_v28  ;;  %v1084_v28 = vld [vmem:[%s3774_s5] sm:$0xff] }
  0xa5   : > { %1118 = vperm.xlu0 %2533, %v1084_v28  }
  0xa6   : > { %v3066_v41 = vpop.f32.mrf.mxu2 }
  0xab   : > { %2269 = vmatmul.msk.bf16.gmra.mxu2 %vm720_vm0, %v2187_v43  ;;  %v2440_v43 = vld [vmem:[%s3772_s3 + $0xf4] sm:$0xf] }
  0xac   : > { %v2195_v54 = vor.u32 %v2440_v43, %v2192_v35 }
  0xad   : > { %1123 = vperm.xlu0 %2533, %v1085_v44  }
  0xae   : > { %v3099_v56 = vpop.f32.mrf.mxu2  ;;  %v778_v57 = vpop.f32.mrf.mxu0 }
  0xb1   : > { %v867_v60 = vpop.f32.mrf.mxu1  ;;  %817 = vmatmul.bf16.gmra.mxu0 %v2167_v52  ;;  %2274 = vmatmul.msk.bf16.vlgmr.msra.gmra.mxu3 %vm720_vm0, %v2247_v53 }
  0xb2   : > { %v868_v38 = vadd.f32 %v867_v60, %v778_v57  ;;  %v2222_v60 = vld [vmem:[%s3772_s3 + $0x128] sm:$0xf] }
  0xb3   : > { %v2223_v1 = vor.u32 %v2448_v61, %v2222_v60 }
  0xb4   : > { %906 = vmatmul.bf16.gmra.mxu1 %v2171_v58  ;;  %v3114_v22 = vpop.f32.mrf.mxu3  ;;  %v957_v48 = vadd.f32 %v3040_v27, %v868_v38  ;;  %v1086_v27 = vld [vmem:[%s3774_s5 + $0x10] sm:$0xff] }
  0xb5   : > { %1128 = vperm.xlu1 %2534, %v1086_v27  }
  0xb6   : > { %v3122_v4 = vpop.f32.mrf.mxu2  ;;  %v780_v5 = vpop.f32.mrf.mxu0 }
  0xb9   : > { %v869_v6 = vpop.f32.mrf.mxu1 }
  0xba   : > { %v870_v36 = vadd.f32 %v869_v6, %v780_v5  ;;  %v2444_v5 = vld [vmem:[%s3772_s3 + $0x110] sm:$0xf0] }
  0xbb   : > { %2270 = vmatmul.msk.bf16.gmra.mxu2 %vm720_vm0, %v2199_v7  ;;  %v2443_v7 = vld [vmem:[%s3772_s3 + $0x10c] sm:$0xf] }
  0xbc   : > { %v3143_v16 = vpop.f32.mrf.mxu3  ;;  %v959_v42 = vadd.f32 %v3066_v41, %v870_v36  ;;  %v2286_v41 = vld [vmem:[%s3773_s4 + $0x8] sm:$0xf] }
  0xbd   : > { %v2287_v50 = vor.u32 %v2461_v46, %v2286_v41  ;;  %1133 = vperm.xlu1 %2534, %v1087_v10  }
  0xbe   : > { %v3145_v20 = vpop.f32.mrf.mxu2  ;;  %v783_v21 = vpop.f32.mrf.mxu0  ;;  %v3201_v57 = vpack.c.bf16 %v959_v42, %v957_v48  ;;  %v1091_v48 = vld [vmem:[%s3774_s5 + $0x38] sm:$0xff] }
  0xbf   : > { %1621 = vmatpush.bf16.msrb.mxu0 %v2287_v50 }
  0xc1   : > { %v872_v25 = vpop.f32.mrf.mxu1  ;;  %822 = vmatmul.bf16.gmra.mxu0 %v2179_v17  ;;  %2275 = vmatmul.msk.bf16.gmra.mxu3 %vm720_vm0, %v2259_v19  ;;  %v2207_v17 = vor.u32 %v2443_v7, %v2204_v8  ;;  %v1094_v7 = vld [vmem:[%s3774_s5 + $0x50] sm:$0xff] }
  0xc2   : > { %v873_v2 = vadd.f32 %v872_v25, %v783_v21 }
  0xc4   : > { %911 = vmatmul.bf16.gmra.mxu1 %v2183_v23  ;;  %v3157_v31 = vpop.f32.mrf.mxu3  ;;  %v962_v12 = vadd.f32 %v3099_v56, %v873_v2  ;;  %v2451_v56 = vld [vmem:[%s3772_s3 + $0x148] sm:$0xf0] }
  0xc5   : > { %v2235_v30 = vor.u32 %v2451_v56, %v2234_v24  ;;  %1153 = vperm.xlu1 %2534, %v1091_v48  }
  0xc6   : > { %v3165_v34 = vpop.f32.mrf.mxu2  ;;  %v785_v18 = vpop.f32.mrf.mxu0 }
  0xc9   : > { %v874_v29 = vpop.f32.mrf.mxu1 }
  0xca   : > { %v875_v13 = vadd.f32 %v874_v29, %v785_v18 }
  0xcb   : > { %2271 = vmatmul.msk.bf16.gmra.mxu2 %vm720_vm0, %v2211_v37 }
  0xcc   : > { %v3184_v45 = vpop.f32.mrf.mxu3  ;;  %v964_v6 = vadd.f32 %v3122_v4, %v875_v13  ;;  %v2203_v4 = vor.u32 %v2444_v5, %v2202_v3  ;;  %v1093_v13 = vld [vmem:[%s3774_s5 + $0x48] sm:$0xff] }
  0xcd   : > { %1168 = vperm.xlu1 %2534, %v1094_v7  }
  0xce   : > { %v3199_v52 = vpop.f32.mrf.mxu2  ;;  %v788_v53 = vpop.f32.mrf.mxu0  ;;  %v1037_v19 = vpack.c.bf16 %v964_v6, %v962_v12 }
  0xd1   : > { %v877_v58 = vpop.f32.mrf.mxu1  ;;  %827 = vmatmul.bf16.gmra.mxu0 %v2191_v49  ;;  %1444 = vmatmul.bf16.vlgmr.msrb.gmra.mxu3 %v3201_v57 }
  0xd2   : > { %v878_v32 = vadd.f32 %v877_v58, %v788_v53 }
  0xd4   : > { %916 = vmatmul.bf16.gmra.mxu1 %v2195_v54  ;;  %v3207_v59 = vpop.f32.mrf.mxu3  ;;  %v967_v36 = vadd.f32 %v3145_v20, %v878_v32 }
  0xd6   : > { %v973_v62 = vpop.f32.mrf.mxu2  ;;  %v790_v63 = vpop.f32.mrf.mxu0 }
  0xd9   : > { %v879_v0 = vpop.f32.mrf.mxu1 }
  0xda   : > { %v880_v26 = vadd.f32 %v879_v0, %v790_v63 }
  0xdb   : > { %2272 = vmatmul.msk.bf16.gmra.mxu2 %vm720_vm0, %v2223_v1 }
  0xdc   : > { %v3232_v11 = vpop.f32.mrf.mxu3  ;;  %v969_v33 = vadd.f32 %v3165_v34, %v880_v26  ;;  %v1090_v34 = vld [vmem:[%s3774_s5 + $0x30] sm:$0xff] }
  0xdd   : > { %1148 = vperm.xlu0 %2533, %v1090_v34  }
  0xde   : > { %v3235_v14 = vpop.f32.mrf.mxu2  ;;  %v793_v15 = vpop.f32.mrf.mxu0  ;;  %v3252_v38 = vpack.c.bf16 %v969_v33, %v967_v36 }
  0xe1   : > { %v882_v21 = vpop.f32.mrf.mxu1  ;;  %832 = vmatmul.bf16.gmra.mxu0 %v2203_v4  ;;  %1449 = vmatmul.bf16.gmra.mxu3 %v1037_v19 }
  0xe2   : > { %v883_v41 = vadd.f32 %v882_v21, %v793_v15 }
  0xe4   : > { %921 = vmatmul.bf16.gmra.mxu1 %v2207_v17  ;;  %v3237_v23 = vpop.f32.mrf.mxu3 }
  0xe5   : > { %1163 = vperm.xlu0 %2533, %v1093_v13  }
  0xe6   : > { %v978_v9 = vpop.f32.mrf.mxu2  ;;  %v795_v25 = vpop.f32.mrf.mxu0 }
  0xe9   : > { %v884_v28 = vpop.f32.mrf.mxu1 }
  0xea   : > { %v885_v35 = vadd.f32 %v884_v28, %v795_v25  ;;  %v1096_v28 = vld [vmem:[%s3774_s5 + $0x60] sm:$0xff] }
  0xeb   : > { %2273 = vmatmul.msk.bf16.gmra.mxu2 %vm720_vm0, %v2235_v30 }
  0xec   : > { %v3247_v18 = vpop.f32.mrf.mxu3  ;;  %v974_v46 = vadd.f32 %v973_v62, %v885_v35 }
  0xed   : > { %1178 = vperm.xlu0 %2533, %v1096_v28  }
  0xee   : > { %v3250_v29 = vpop.f32.mrf.mxu2  ;;  %v798_v37 = vpop.f32.mrf.mxu0 }
  0xf1   : > { %v887_v39 = vpop.f32.mrf.mxu1  ;;  %1454 = vmatmul.bf16.gmra.mxu3 %v3252_v38  ;;  %1622 = vmatmul.bf16.vlgmr.msrb.gmra.mxu0 %v3201_v57 }
  0xf2   : > { %v888_v62 = vadd.f32 %v887_v39, %v798_v37  ;;  %v1097_v39 = vld [vmem:[%s3774_s5 + $0x68] sm:$0xff] }
  0xf3   : > { %1183 = vperm.xlu1 %2534, %v1097_v39  }
  0xf4   : > { %1711 = vmatmul.bf16.vlgmr.msrb.gmra.mxu1 %v3201_v57  ;;  %v927_v40 = vpop.f32.mrf.mxu3  ;;  %v977_v1 = vadd.f32 %v3235_v14, %v888_v62 }
  0xf5   : > { %v3261_v20 = vadd.f32 %v927_v40, %v3114_v22  ;;  %v972_v22 = vadd.f32 %v3199_v52, %v883_v41  ;;  %v1095_v41 = vld [vmem:[%s3774_s5 + $0x58] sm:$0xff] }
  0xf6   : > { %v983_v42 = vpop.f32.mrf.mxu2  ;;  %v800_v43 = vpop.f32.mrf.mxu0 }
  0xf7   : > { %v1039_v54 = vpack.c.bf16 %v974_v46, %v972_v22 }
  0xf9   : > { %v889_v44 = vpop.f32.mrf.mxu1 }
  0xfa   : > { %v890_v60 = vadd.f32 %v889_v44, %v800_v43 }
  0xfb   : > { %1533 = vmatmul.bf16.vlgmr.msrb.gmra.mxu2 %v3201_v57  ;;  %v1089_v57 = vld [vmem:[%s3774_s5 + $0x28] sm:$0xff] }
  0xfc   : > { %v929_v49 = vpop.f32.mrf.mxu3  ;;  %1143 = vperm.xlu2 %2535, %v1089_v57   ;;  %v979_v63 = vadd.f32 %v978_v9, %v890_v60 }
  0xfd   : > { %v3272_v50 = vadd.f32 %v929_v49, %v3143_v16 }
  0xfe   : > { %v3274_v51 = vpop.f32.mrf.mxu2  ;;  %v803_v53 = vpop.f32.mrf.mxu0  ;;  %v1040_v5 = vpack.c.bf16 %v979_v63, %v977_v1  ;;  %v1100_v63 = vld [vmem:[%s3774_s5 + $0x80] sm:$0xff] }
  0xff   : > { %1198 = vperm.xlu1 %2534, %v1100_v63  }
 0x101   : > { %v892_v55 = vpop.f32.mrf.mxu1  ;;  %1459 = vmatmul.bf16.gmra.mxu3 %v1039_v54  ;;  %1627 = vmatmul.bf16.gmra.mxu0 %v1037_v19 }
 0x102   : > { %v893_v15 = vadd.f32 %v892_v55, %v803_v53 }
 0x104   : > { %1716 = vmatmul.bf16.gmra.mxu1 %v1037_v19  ;;  %v932_v58 = vpop.f32.mrf.mxu3  ;;  %v982_v24 = vadd.f32 %v3250_v29, %v893_v15 }
 0x105   : > { %v3280_v27 = vadd.f32 %v932_v58, %v3157_v31 }
 0x106   : > { %v988_v52 = vpop.f32.mrf.mxu2  ;;  %v805_v16 = vpop.f32.mrf.mxu0 }
 0x109   : > { %v894_v61 = vpop.f32.mrf.mxu1 }
 0x10a   : > { %v895_v4 = vadd.f32 %v894_v61, %v805_v16 }
 0x10b   : > { %1538 = vmatmul.bf16.gmra.mxu2 %v1037_v19  ;;  %v1092_v19 = vld [vmem:[%s3774_s5 + $0x40] sm:$0xff] }
 0x10c   : > { %v934_v0 = vpop.f32.mrf.mxu3  ;;  %v984_v17 = vadd.f32 %v983_v42, %v895_v4  ;;  %1158 = vperm.xlu2 %2535, %v1092_v19  }
 0x10d   : > { %v3287_v2 = vadd.f32 %v934_v0, %v3184_v45 }
 0x10e   : > { %v3289_v31 = vpop.f32.mrf.mxu2  ;;  %v808_v3 = vpop.f32.mrf.mxu0  ;;  %v1041_v25 = vpack.c.bf16 %v984_v17, %v982_v24  ;;  %v1102_v24 = vld [vmem:[%s3774_s5 + $0x90] sm:$0xff] }
 0x111   : > { %v897_v6 = vpop.f32.mrf.mxu1  ;;  %1464 = vmatmul.bf16.gmra.mxu3 %v1040_v5  ;;  %1632 = vmatmul.bf16.gmra.mxu0 %v3252_v38 }
 0x112   : > { %v898_v37 = vadd.f32 %v897_v6, %v808_v3 }
 0x114   : > { %1721 = vmatmul.bf16.gmra.mxu1 %v3252_v38  ;;  %v937_v8 = vpop.f32.mrf.mxu3  ;;  %v987_v40 = vadd.f32 %v3274_v51, %v898_v37  ;;  %1173 = vperm.xlu2 %2535, %v1095_v41  }
 0x115   : > { %v938_v10 = vadd.f32 %v937_v8, %v3207_v59  ;;  %v1098_v8 = vld [vmem:[%s3774_s5 + $0x70] sm:$0xff] }
 0x116   : > { %v993_v45 = vpop.f32.mrf.mxu2  ;;  %v810_v12 = vpop.f32.mrf.mxu0 }
 0x119   : > { %v899_v14 = vpop.f32.mrf.mxu1 }
 0x11a   : > { %v900_v29 = vadd.f32 %v899_v14, %v810_v12 }
 0x11b   : > { %1543 = vmatmul.bf16.gmra.mxu2 %v3252_v38 }
 0x11c   : > { %v939_v21 = vpop.f32.mrf.mxu3  ;;  %v989_v38 = vadd.f32 %v988_v52, %v900_v29  ;;  %1188 = vperm.xlu2 %2535, %v1098_v8  }
 0x11d   : > { %v940_v56 = vadd.f32 %v939_v21, %v3232_v11  ;;  %v3348_v21 = vpop.permute.xlu0 %1118 }
 0x11e   : > { %v3303_v9 = vpop.f32.mrf.mxu2  ;;  %v813_v59 = vpop.f32.mrf.mxu0  ;;  %v3316_v35 = vpack.c.bf16 %v989_v38, %v987_v40 }
 0x121   : > { %v902_v26 = vpop.f32.mrf.mxu1  ;;  %1469 = vmatmul.bf16.gmra.mxu3 %v1041_v25  ;;  %1637 = vmatmul.bf16.gmra.mxu0 %v1039_v54 }
 0x122   : > { %v903_v51 = vadd.f32 %v902_v26, %v813_v59 }
 0x124   : > { %1726 = vmatmul.bf16.gmra.mxu1 %v1039_v54  ;;  %v942_v30 = vpop.f32.mrf.mxu3  ;;  %v992_v57 = vadd.f32 %v3289_v31, %v903_v51 }
 0x125   : > { %v943_v32 = vadd.f32 %v942_v30, %v3237_v23 }
 0x126   : > { %v998_v33 = vpop.f32.mrf.mxu2  ;;  %v815_v36 = vpop.f32.mrf.mxu0 }
 0x129   : > { %v904_v11 = vpop.f32.mrf.mxu1 }
 0x12b   : > { %1548 = vmatmul.bf16.gmra.mxu2 %v1039_v54  ;;  %v1099_v54 = vld [vmem:[%s3774_s5 + $0x78] sm:$0xff] }
 0x12c   : > { %v944_v34 = vpop.f32.mrf.mxu3  ;;  %1193 = vperm.xlu0 %2533, %v1099_v54   ;;  %v1105_v54 = vld [vmem:[%s3774_s5 + $0xa8] sm:$0xff] }
 0x12d   : > { %v945_v42 = vadd.f32 %v944_v34, %v3247_v18  ;;  %v905_v18 = vadd.f32 %v904_v11, %v815_v36  ;;  %v1103_v36 = vld [vmem:[%s3774_s5 + $0x98] sm:$0xff] }
 0x12e   : > { %v3314_v43 = vpop.f32.mrf.mxu2  ;;  %v818_v23 = vpop.f32.mrf.mxu0  ;;  %1213 = vperm.xlu1 %2534, %v1103_v36   ;;  %v1108_v36 = vld [vmem:[%s3774_s5 + $0xc0] sm:$0xff] }
 0x12f   : > { %v994_v53 = vadd.f32 %v993_v45, %v905_v18 }
 0x131   : > { %v907_v44 = vpop.f32.mrf.mxu1  ;;  %1474 = vmatmul.bf16.gmra.mxu3 %v3316_v35  ;;  %1642 = vmatmul.bf16.gmra.mxu0 %v1040_v5  ;;  %v3328_v60 = vpack.c.bf16 %v994_v53, %v992_v57 }
 0x132   : > { %v908_v6 = vadd.f32 %v907_v44, %v818_v23 }
 0x134   : > { %1731 = vmatmul.bf16.gmra.mxu1 %v1040_v5  ;;  %v1026_v46 = vpop.f32.mrf.mxu3  ;;  %v997_v45 = vadd.f32 %v3303_v9, %v908_v6  ;;  %1208 = vperm.xlu0 %2533, %v1102_v24  }
 0x135   : > { %v1027_v47 = vadd.f32 %v1026_v46, %v938_v10 }
 0x136   : > { %v1003_v48 = vpop.f32.mrf.mxu2  ;;  %v820_v49 = vpop.f32.mrf.mxu0 }
 0x139   : > { %v909_v22 = vpop.f32.mrf.mxu1 }
 0x13a   : > { %v910_v3 = vadd.f32 %v909_v22, %v820_v49 }
 0x13b   : > { %1553 = vmatmul.bf16.gmra.mxu2 %v1040_v5 }
 0x13c   : > { %v1028_v55 = vpop.f32.mrf.mxu3  ;;  %v999_v7 = vadd.f32 %v998_v33, %v910_v3  ;;  %1223 = vperm.xlu0 %2533, %v1105_v54  }
 0x13d   : > { %v1029_v58 = vadd.f32 %v1028_v55, %v940_v56 }
 0x13e   : > { %v3326_v52 = vpop.f32.mrf.mxu2  ;;  %v823_v16 = vpop.f32.mrf.mxu0  ;;  %v3344_v15 = vpack.c.bf16 %v999_v7, %v997_v45 }
 0x13f   : > { %v3330_v61 = vpack.c.bf16 %v1029_v58, %v1027_v47 }
 0x141   : > { %v912_v62 = vpop.f32.mrf.mxu1  ;;  %1479 = vmatmul.bf16.gmra.mxu3 %v3328_v60  ;;  %1647 = vmatmul.bf16.gmra.mxu0 %v1041_v25 }
 0x142   : > { %v913_v30 = vadd.f32 %v912_v62, %v823_v16 }
 0x144   : > { %1736 = vmatmul.bf16.gmra.mxu1 %v1041_v25  ;;  %v1031_v13 = vpop.f32.mrf.mxu3  ;;  %v1002_v11 = vadd.f32 %v3314_v43, %v913_v30  ;;  %v1101_v43 = vld [vmem:[%s3774_s5 + $0x88] sm:$0xff]  ;;  %1238 = vperm.xlu0 %2533, %v1108_v36  }
 0x145   : > { %v1032_v0 = vadd.f32 %v1031_v13, %v943_v32  ;;  %v3366_v32 = vpop.permute.xlu0 %1123  ;;  %1203 = vperm.xlu2 %2535, %v1101_v43   ;;  %v3405_v13 = vpop.permute.xlu2 %1138 }
 0x146   : > { %v3336_v1 = vpop.f32.mrf.mxu2  ;;  %v825_v31 = vpop.f32.mrf.mxu0 }
 0x149   : > { %v914_v5 = vpop.f32.mrf.mxu1 }
 0x14a   : > { %v915_v26 = vadd.f32 %v914_v5, %v825_v31 }
 0x14b   : > { %1558 = vmatmul.bf16.gmra.mxu2 %v1041_v25 }
 0x14c   : > { %v1033_v10 = vpop.f32.mrf.mxu3  ;;  %v1004_v33 = vadd.f32 %v1003_v48, %v915_v26 }
 0x14d   : > { %v1034_v12 = vadd.f32 %v1033_v10, %v945_v42  ;;  %v3377_v42 = vpop.permute.xlu1 %1128 }
 0x14e   : > { %v3342_v4 = vpop.f32.mrf.mxu2  ;;  %v828_v14 = vpop.f32.mrf.mxu0  ;;  %v3374_v34 = vpack.c.bf16 %v1004_v33, %v1002_v11 }
 0x14f   : > { %v3346_v17 = vpack.c.bf16 %v1034_v12, %v1032_v0 }
 0x151   : > { %v917_v19 = vpop.f32.mrf.mxu1  ;;  %1484 = vmatmul.bf16.gmra.mxu3 %v3344_v15  ;;  %1652 = vmatmul.bf16.gmra.mxu0 %v3316_v35 }
 0x152   : > { %v918_v18 = vadd.f32 %v917_v19, %v828_v14 }
 0x154   : > { %1741 = vmatmul.bf16.gmra.mxu1 %v3316_v35  ;;  %v1445_v56 = vpop.f32.mrf.mxu3 }
 0x155   : > { %v1446_v9 = vadd.f32 %v1445_v56, %v3348_v21  ;;  %v3391_v51 = vpop.permute.xlu1 %1133 }
 0x156   : > { %v3363_v59 = vpop.f32.mrf.mxu2  ;;  %v830_v25 = vpop.f32.mrf.mxu0 }
 0x157   : > { %1792 = vst [vmem:[%s3360_s12] sm:$0xff] %v1446_v9  ;;  %v3425_v19 = vpop.permute.xlu2 %1143 }
 0x159   : > { %v919_v28 = vpop.f32.mrf.mxu1 }
 0x15a   : > { %v920_v46 = vadd.f32 %v919_v28, %v830_v25 }
 0x15b   : > { %1563 = vmatmul.bf16.gmra.mxu2 %v3316_v35 }
 0x15c   : > { %v1447_v29 = vpop.f32.mrf.mxu3  ;;  %v1009_v53 = vadd.f32 %v3336_v1, %v920_v46 }
 0x15d   : > { %v1448_v37 = vadd.f32 %v1447_v29, %v3366_v32 }
 0x15e   : > { %v1016_v38 = vpop.f32.mrf.mxu2  ;;  %v833_v39 = vpop.f32.mrf.mxu0 }
 0x15f   : > { %1796 = vst [vmem:[%s3360_s12 + $0x20] sm:$0xff] %v1448_v37  ;;  %v1017_v47 = vadd.f32 %v1016_v38, %v3261_v20 }
 0x161   : > { %v922_v40 = vpop.f32.mrf.mxu1  ;;  %1489 = vmatmul.bf16.gmra.mxu3 %v3374_v34  ;;  %1657 = vmatmul.bf16.gmra.mxu0 %v3328_v60 }
 0x162   : > { %v923_v12 = vadd.f32 %v922_v40, %v833_v39 }
 0x164   : > { %1746 = vmatmul.bf16.gmra.mxu1 %v3328_v60  ;;  %v1450_v23 = vpop.f32.mrf.mxu3  ;;  %v1012_v56 = vadd.f32 %v3342_v4, %v923_v12  ;;  %v3445_v4 = vpop.permute.xlu0 %1148 }
 0x165   : > { %v1451_v35 = vadd.f32 %v1450_v23, %v3377_v42 }
 0x166   : > { %v1018_v44 = vpop.f32.mrf.mxu2  ;;  %v835_v41 = vpop.f32.mrf.mxu0 }
 0x167   : > { %v1019_v48 = vadd.f32 %v1018_v44, %v3272_v50  ;;  %1800 = vst [vmem:[%s3360_s12 + $0x40] sm:$0xff] %v1451_v35  ;;  %v1007_v50 = vadd.f32 %v3326_v52, %v918_v18  ;;  %v1106_v52 = vld [vmem:[%s3774_s5 + $0xb0] sm:$0xff]  ;;  %v3461_v35 = vpop.permute.xlu1 %1153  ;;  %v1112_v44 = vld [vmem:[%s3774_s5 + $0xe0] sm:$0xff]  ;;  %v3481_v54 = vpop.permute.xlu2 %1158 }
 0x168   : > { %1228 = vperm.xlu1 %2534, %v1106_v52  }
 0x169   : > { %v924_v49 = vpop.f32.mrf.mxu1  ;;  %v3389_v22 = vpack.c.bf16 %v1019_v48, %v1017_v47  ;;  %v3400_v16 = vpack.c.bf16 %v1009_v53, %v1007_v50  ;;  %v1114_v50 = vld [vmem:[%s3774_s5 + $0xf0] sm:$0xff] }
 0x16a   : > { %v925_v5 = vadd.f32 %v924_v49, %v835_v41 }
 0x16b   : > { %1568 = vmatmul.bf16.gmra.mxu2 %v3328_v60 }
 0x16c   : > { %v1452_v20 = vpop.f32.mrf.mxu3  ;;  %v1014_v24 = vadd.f32 %v3363_v59, %v925_v5 }
 0x16d   : > { %v1453_v55 = vadd.f32 %v1452_v20, %v3391_v51  ;;  %v1115_v20 = vld [vmem:[%s3774_s5 + $0xf8] sm:$0xff] }
 0x16e   : > { %v1021_v57 = vpop.f32.mrf.mxu2  ;;  %v1623_v58 = vpop.f32.mrf.mxu0  ;;  %v3434_v28 = vpack.c.bf16 %v1014_v24, %v1012_v56 }
 0x16f   : > { %1804 = vst [vmem:[%s3360_s12 + $0x60] sm:$0xff] %v1453_v55  ;;  %v1624_v62 = vadd.f32 %v1623_v58, %v3348_v21  ;;  %v1022_v6 = vadd.f32 %v1021_v57, %v3280_v27  ;;  %v1104_v27 = vld [vmem:[%s3774_s5 + $0xa0] sm:$0xff] }
 0x170   : > { %1218 = vperm.xlu2 %2535, %v1104_v27  }
 0x171   : > { %v1712_v63 = vpop.f32.mrf.mxu1  ;;  %1794 = vst [vmem:[%s3360_s12 + $0x10] sm:$0xff] %v1624_v62  ;;  %1494 = vmatmul.bf16.gmra.mxu3 %v3400_v16  ;;  %1662 = vmatmul.bf16.gmra.mxu0 %v3344_v15 }
 0x172   : > { %v1713_v60 = vadd.f32 %v1712_v63, %v3348_v21 }
 0x174   : > { %1795 = vst [vmem:[%s3360_s12 + $0x18] sm:$0xff] %v1713_v60  ;;  %1751 = vmatmul.bf16.gmra.mxu1 %v3344_v15  ;;  %v1455_v0 = vpop.f32.mrf.mxu3 }
 0x175   : > { %v1456_v1 = vadd.f32 %v1455_v0, %v3405_v13 }
 0x176   : > { %v1023_v31 = vpop.f32.mrf.mxu2  ;;  %v1625_v3 = vpop.f32.mrf.mxu0 }
 0x177   : > { %v1024_v7 = vadd.f32 %v1023_v31, %v3287_v2  ;;  %1808 = vst [vmem:[%s3360_s12 + $0x80] sm:$0xff] %v1456_v1  ;;  %v1626_v8 = vadd.f32 %v1625_v3, %v3366_v32  ;;  %v3500_v1 = vpop.permute.xlu0 %1163 }
 0x179   : > { %v1714_v10 = vpop.f32.mrf.mxu1  ;;  %v3421_v14 = vpack.c.bf16 %v1024_v7, %v1022_v6  ;;  %1798 = vst [vmem:[%s3360_s12 + $0x30] sm:$0xff] %v1626_v8 }
 0x17a   : > { %v1715_v45 = vadd.f32 %v1714_v10, %v3366_v32 }
 0x17b   : > { %1573 = vmatmul.bf16.gmra.mxu2 %v3344_v15 }
 0x17c   : > { %1799 = vst [vmem:[%s3360_s12 + $0x38] sm:$0xff] %v1715_v45  ;;  %v1457_v2 = vpop.f32.mrf.mxu3 }
 0x17d   : > { %v1458_v9 = vadd.f32 %v1457_v2, %v3425_v19 }
 0x17e   : > { %v1534_v25 = vpop.f32.mrf.mxu2  ;;  %v1628_v26 = vpop.f32.mrf.mxu0 }
 0x17f   : > { %1812 = vst [vmem:[%s3360_s12 + $0xa0] sm:$0xff] %v1458_v9  ;;  %v1535_v59 = vadd.f32 %v1534_v25, %v3348_v21  ;;  %v1629_v15 = vadd.f32 %v1628_v26, %v3377_v42  ;;  %v1109_v21 = vld [vmem:[%s3774_s5 + $0xc8] sm:$0xff]  ;;  %v3524_v25 = vpop.permute.xlu2 %1173  ;;  %v1110_v26 = vld [vmem:[%s3774_s5 + $0xd0] sm:$0xff] }
 0x180   : > { %1243 = vperm.xlu1 %2534, %v1109_v21  }
 0x181   : > { %v1717_v30 = vpop.f32.mrf.mxu1  ;;  %1793 = vst [vmem:[%s3360_s12 + $0x8] sm:$0xff] %v1535_v59  ;;  %1499 = vmatmul.bf16.gmra.mxu3 %v3434_v28  ;;  %1667 = vmatmul.bf16.gmra.mxu0 %v3374_v34 }
 0x182   : > { %v1718_v33 = vadd.f32 %v1717_v30, %v3377_v42  ;;  %1802 = vst [vmem:[%s3360_s12 + $0x50] sm:$0xff] %v1629_v15 }
 0x184   : > { %1756 = vmatmul.bf16.gmra.mxu1 %v3374_v34  ;;  %1803 = vst [vmem:[%s3360_s12 + $0x58] sm:$0xff] %v1718_v33  ;;  %v1460_v29 = vpop.f32.mrf.mxu3 }
 0x185   : > { %v1461_v11 = vadd.f32 %v1460_v29, %v3445_v4  ;;  %v3541_v29 = vpop.permute.xlu0 %1178 }
 0x186   : > { %v1536_v37 = vpop.f32.mrf.mxu2  ;;  %v1630_v38 = vpop.f32.mrf.mxu0 }
 0x187   : > { %1816 = vst [vmem:[%s3360_s12 + $0xc0] sm:$0xff] %v1461_v11  ;;  %v1537_v39 = vadd.f32 %v1536_v37, %v3366_v32  ;;  %v1631_v40 = vadd.f32 %v1630_v38, %v3391_v51  ;;  %v1111_v32 = vld [vmem:[%s3774_s5 + $0xd8] sm:$0xff] }
 0x188   : > { %1258 = vperm.xlu1 %2534, %v1112_v44   ;;  %1253 = vperm.xlu0 %2533, %v1111_v32  }
 0x189   : > { %v1719_v43 = vpop.f32.mrf.mxu1  ;;  %1797 = vst [vmem:[%s3360_s12 + $0x28] sm:$0xff] %v1537_v39 }
 0x18a   : > { %v1720_v23 = vadd.f32 %v1719_v43, %v3391_v51  ;;  %1806 = vst [vmem:[%s3360_s12 + $0x70] sm:$0xff] %v1631_v40 }
 0x18b   : > { %1578 = vmatmul.bf16.gmra.mxu2 %v3374_v34 }
 0x18c   : > { %1807 = vst [vmem:[%s3360_s12 + $0x78] sm:$0xff] %v1720_v23  ;;  %v1462_v41 = vpop.f32.mrf.mxu3 }
 0x18d   : > { %v1463_v46 = vadd.f32 %v1462_v41, %v3461_v35 }
 0x18e   : > { %v1539_v47 = vpop.f32.mrf.mxu2  ;;  %v1633_v48 = vpop.f32.mrf.mxu0 }
 0x18f   : > { %1820 = vst [vmem:[%s3360_s12 + $0xe0] sm:$0xff] %v1463_v46  ;;  %v1540_v34 = vadd.f32 %v1539_v47, %v3377_v42  ;;  %v1634_v49 = vadd.f32 %v1633_v48, %v3405_v13  ;;  %v1107_v42 = vld [vmem:[%s3774_s5 + $0xb8] sm:$0xff] }
 0x190   : > { %1233 = vperm.xlu2 %2535, %v1107_v42   ;;  %1273 = vperm.xlu1 %2534, %v1115_v20  }
 0x191   : > { %v1722_v18 = vpop.f32.mrf.mxu1  ;;  %1801 = vst [vmem:[%s3360_s12 + $0x48] sm:$0xff] %v1540_v34  ;;  %1504 = vmatmul.bf16.gmra.mxu3 %v3389_v22  ;;  %1672 = vmatmul.bf16.gmra.mxu0 %v3400_v16 }
 0x192   : > { %v1723_v53 = vadd.f32 %v1722_v18, %v3405_v13  ;;  %1810 = vst [vmem:[%s3360_s12 + $0x90] sm:$0xff] %v1634_v49  ;;  %1268 = vperm.xlu0 %2533, %v1114_v50  }
 0x194   : > { %1761 = vmatmul.bf16.gmra.mxu1 %v3400_v16  ;;  %1811 = vst [vmem:[%s3360_s12 + $0x98] sm:$0xff] %v1723_v53  ;;  %v1465_v55 = vpop.f32.mrf.mxu3 }
 0x195   : > { %v1466_v57 = vadd.f32 %v1465_v55, %v3481_v54 }
 0x196   : > { %v1541_v58 = vpop.f32.mrf.mxu2  ;;  %v1635_v62 = vpop.f32.mrf.mxu0 }
 0x197   : > { %1824 = vst [vmem:[%s3360_s12 + $0x100] sm:$0xff] %v1466_v57  ;;  %v1542_v63 = vadd.f32 %v1541_v58, %v3391_v51  ;;  %v1636_v60 = vadd.f32 %v1635_v62, %v3425_v19 }
 0x198   : > { %1248 = vperm.xlu2 %2535, %v1110_v26  }
 0x199   : > { %v1724_v52 = vpop.f32.mrf.mxu1  ;;  %1805 = vst [vmem:[%s3360_s12 + $0x68] sm:$0xff] %v1542_v63 }
 0x19a   : > { %v1725_v0 = vadd.f32 %v1724_v52, %v3425_v19  ;;  %1814 = vst [vmem:[%s3360_s12 + $0xb0] sm:$0xff] %v1636_v60 }
 0x19b   : > { %1583 = vmatmul.bf16.gmra.mxu2 %v3400_v16  ;;  %v3514_v16 = vpop.permute.xlu1 %1168 }
 0x19c   : > { %1815 = vst [vmem:[%s3360_s12 + $0xb8] sm:$0xff] %v1725_v0  ;;  %v1467_v31 = vpop.f32.mrf.mxu3 }
 0x19d   : > { %v1468_v3 = vadd.f32 %v1467_v31, %v3500_v1 }
 0x19e   : > { %v1544_v5 = vpop.f32.mrf.mxu2  ;;  %v1638_v51 = vpop.f32.mrf.mxu0 }
 0x19f   : > { %1828 = vst [vmem:[%s3360_s12 + $0x120] sm:$0xff] %v1468_v3  ;;  %v1545_v6 = vadd.f32 %v1544_v5, %v3405_v13  ;;  %v1639_v7 = vadd.f32 %v1638_v51, %v3445_v4  ;;  %v3578_v62 = vpop.permute.xlu0 %1193 }
 0x1a1   : > { %v1727_v8 = vpop.f32.mrf.mxu1  ;;  %1809 = vst [vmem:[%s3360_s12 + $0x88] sm:$0xff] %v1545_v6  ;;  %1509 = vmatmul.bf16.gmra.mxu3 %v3421_v14  ;;  %1677 = vmatmul.bf16.gmra.mxu0 %v3434_v28 }
 0x1a2   : > { %v1728_v10 = vadd.f32 %v1727_v8, %v3445_v4  ;;  %1818 = vst [vmem:[%s3360_s12 + $0xd0] sm:$0xff] %v1639_v7 }
 0x1a3   : > { %v3554_v32 = vpop.permute.xlu1 %1183 }
 0x1a4   : > { %1766 = vmatmul.bf16.gmra.mxu1 %v3434_v28  ;;  %1819 = vst [vmem:[%s3360_s12 + $0xd8] sm:$0xff] %v1728_v10  ;;  %v1470_v13 = vpop.f32.mrf.mxu3 }
 0x1a5   : > { %v1471_v45 = vadd.f32 %v1470_v13, %v3514_v16 }
 0x1a6   : > { %v1546_v12 = vpop.f32.mrf.mxu2  ;;  %v1640_v24 = vpop.f32.mrf.mxu0 }
 0x1a7   : > { %1832 = vst [vmem:[%s3360_s12 + $0x140] sm:$0xff] %v1471_v45  ;;  %v1547_v27 = vadd.f32 %v1546_v12, %v3425_v19  ;;  %v1641_v2 = vadd.f32 %v1640_v24, %v3461_v35 }
 0x1a9   : > { %v1729_v56 = vpop.f32.mrf.mxu1  ;;  %1813 = vst [vmem:[%s3360_s12 + $0xa8] sm:$0xff] %v1547_v27 }
 0x1aa   : > { %v1730_v9 = vadd.f32 %v1729_v56, %v3461_v35  ;;  %1822 = vst [vmem:[%s3360_s12 + $0xf0] sm:$0xff] %v1641_v2 }
 0x1ab   : > { %1588 = vmatmul.bf16.gmra.mxu2 %v3434_v28 }
 0x1ac   : > { %1823 = vst [vmem:[%s3360_s12 + $0xf8] sm:$0xff] %v1730_v9  ;;  %v1472_v59 = vpop.f32.mrf.mxu3 }
 0x1ad   : > { %v1473_v19 = vadd.f32 %v1472_v59, %v3524_v25 }
 0x1ae   : > { %v1549_v15 = vpop.f32.mrf.mxu2  ;;  %v1643_v30 = vpop.f32.mrf.mxu0 }
 0x1af   : > { %1836 = vst [vmem:[%s3360_s12 + $0x160] sm:$0xff] %v1473_v19  ;;  %v1550_v33 = vadd.f32 %v1549_v15, %v3445_v4  ;;  %v1644_v21 = vadd.f32 %v1643_v30, %v3481_v54  ;;  %v1113_v4 = vld [vmem:[%s3774_s5 + $0xe8] sm:$0xff] }
 0x1b0   : > { %1263 = vperm.xlu2 %2535, %v1113_v4  }
 0x1b1   : > { %v1732_v36 = vpop.f32.mrf.mxu1  ;;  %1817 = vst [vmem:[%s3360_s12 + $0xc8] sm:$0xff] %v1550_v33  ;;  %1514 = vmatmul.bf16.gmra.mxu3 %v3330_v61  ;;  %1682 = vmatmul.bf16.gmra.mxu0 %v3389_v22 }
 0x1b2   : > { %v1733_v28 = vadd.f32 %v1732_v36, %v3481_v54  ;;  %1826 = vst [vmem:[%s3360_s12 + $0x110] sm:$0xff] %v1644_v21 }
 0x1b4   : > { %1771 = vmatmul.bf16.gmra.mxu1 %v3389_v22  ;;  %1827 = vst [vmem:[%s3360_s12 + $0x118] sm:$0xff] %v1733_v28  ;;  %v1475_v11 = vpop.f32.mrf.mxu3 }
 0x1b5   : > { %v1476_v37 = vadd.f32 %v1475_v11, %v3541_v29 }
 0x1b6   : > { %v1551_v38 = vpop.f32.mrf.mxu2  ;;  %v1645_v39 = vpop.f32.mrf.mxu0 }
 0x1b7   : > { %1840 = vst [vmem:[%s3360_s12 + $0x180] sm:$0xff] %v1476_v37  ;;  %v1552_v40 = vadd.f32 %v1551_v38, %v3461_v35  ;;  %v1646_v43 = vadd.f32 %v1645_v39, %v3500_v1 }
 0x1b9   : > { %v1734_v23 = vpop.f32.mrf.mxu1  ;;  %1821 = vst [vmem:[%s3360_s12 + $0xe8] sm:$0xff] %v1552_v40 }
 0x1ba   : > { %v1735_v44 = vadd.f32 %v1734_v23, %v3500_v1  ;;  %1830 = vst [vmem:[%s3360_s12 + $0x130] sm:$0xff] %v1646_v43 }
 0x1bb   : > { %1593 = vmatmul.bf16.gmra.mxu2 %v3389_v22  ;;  %v3568_v22 = vpop.permute.xlu2 %1188 }
 0x1bc   : > { %1831 = vst [vmem:[%s3360_s12 + $0x138] sm:$0xff] %v1735_v44  ;;  %v1477_v41 = vpop.f32.mrf.mxu3 }
 0x1bd   : > { %v1478_v46 = vadd.f32 %v1477_v41, %v3554_v32 }
 0x1be   : > { %v1554_v47 = vpop.f32.mrf.mxu2  ;;  %v1648_v35 = vpop.f32.mrf.mxu0 }
 0x1bf   : > { %1844 = vst [vmem:[%s3360_s12 + $0x1a0] sm:$0xff] %v1478_v46  ;;  %v1555_v48 = vadd.f32 %v1554_v47, %v3481_v54  ;;  %v1649_v34 = vadd.f32 %v1648_v35, %v3514_v16 }
 0x1c1   : > { %v1737_v49 = vpop.f32.mrf.mxu1  ;;  %1825 = vst [vmem:[%s3360_s12 + $0x108] sm:$0xff] %v1555_v48  ;;  %1519 = vmatmul.bf16.gmra.mxu3 %v3346_v17  ;;  %1687 = vmatmul.bf16.gmra.mxu0 %v3421_v14 }
 0x1c2   : > { %v1738_v18 = vadd.f32 %v1737_v49, %v3514_v16  ;;  %1834 = vst [vmem:[%s3360_s12 + $0x150] sm:$0xff] %v1649_v34 }
 0x1c3   : > { %v3601_v12 = vpop.permute.xlu2 %1203 }
 0x1c4   : > { %1776 = vmatmul.bf16.gmra.mxu1 %v3421_v14  ;;  %1835 = vst [vmem:[%s3360_s12 + $0x158] sm:$0xff] %v1738_v18  ;;  %v1480_v53 = vpop.f32.mrf.mxu3 }
 0x1c5   : > { %v1481_v54 = vadd.f32 %v1480_v53, %v3568_v22 }
 0x1c6   : > { %v1556_v42 = vpop.f32.mrf.mxu2  ;;  %v1650_v20 = vpop.f32.mrf.mxu0 }
 0x1c7   : > { %1848 = vst [vmem:[%s3360_s12 + $0x1c0] sm:$0xff] %v1481_v54  ;;  %v1557_v50 = vadd.f32 %v1556_v42, %v3500_v1  ;;  %v1651_v55 = vadd.f32 %v1650_v20, %v3524_v25 }
 0x1c9   : > { %v1739_v57 = vpop.f32.mrf.mxu1  ;;  %1829 = vst [vmem:[%s3360_s12 + $0x128] sm:$0xff] %v1557_v50 }
 0x1ca   : > { %v1740_v58 = vadd.f32 %v1739_v57, %v3524_v25  ;;  %1838 = vst [vmem:[%s3360_s12 + $0x170] sm:$0xff] %v1651_v55 }
 0x1cb   : > { %1598 = vmatmul.bf16.gmra.mxu2 %v3421_v14  ;;  %v3591_v14 = vpop.permute.xlu1 %1198 }
 0x1cc   : > { %1839 = vst [vmem:[%s3360_s12 + $0x178] sm:$0xff] %v1740_v58  ;;  %v1482_v63 = vpop.f32.mrf.mxu3 }
 0x1cd   : > { %v1483_v60 = vadd.f32 %v1482_v63, %v3578_v62 }
 0x1ce   : > { %v1559_v52 = vpop.f32.mrf.mxu2  ;;  %v1653_v0 = vpop.f32.mrf.mxu0 }
 0x1cf   : > { %1852 = vst [vmem:[%s3360_s12 + $0x1e0] sm:$0xff] %v1483_v60  ;;  %v1560_v1 = vadd.f32 %v1559_v52, %v3514_v16  ;;  %v1654_v31 = vadd.f32 %v1653_v0, %v3541_v29 }
 0x1d1   : > { %v1742_v3 = vpop.f32.mrf.mxu1  ;;  %1833 = vst [vmem:[%s3360_s12 + $0x148] sm:$0xff] %v1560_v1  ;;  %1692 = vmatmul.bf16.gmra.mxu0 %v3330_v61 }
 0x1d2   : > { %v1743_v5 = vadd.f32 %v1742_v3, %v3541_v29  ;;  %1842 = vst [vmem:[%s3360_s12 + $0x190] sm:$0xff] %v1654_v31 }
 0x1d3   : > { %v3624_v4 = vpop.permute.xlu1 %1213 }
 0x1d4   : > { %1781 = vmatmul.bf16.gmra.mxu1 %v3330_v61  ;;  %1843 = vst [vmem:[%s3360_s12 + $0x198] sm:$0xff] %v1743_v5  ;;  %v1485_v51 = vpop.f32.mrf.mxu3 }
 0x1d5   : > { %v1486_v6 = vadd.f32 %v1485_v51, %v3591_v14 }
 0x1d6   : > { %v1561_v7 = vpop.f32.mrf.mxu2  ;;  %v1655_v8 = vpop.f32.mrf.mxu0 }
 0x1d7   : > { %1856 = vst [vmem:[%s3360_s12 + $0x200] sm:$0xff] %v1486_v6  ;;  %v1562_v10 = vadd.f32 %v1561_v7, %v3524_v25  ;;  %v1656_v16 = vadd.f32 %v1655_v8, %v3554_v32 }
 0x1d9   : > { %v1744_v13 = vpop.f32.mrf.mxu1  ;;  %1837 = vst [vmem:[%s3360_s12 + $0x168] sm:$0xff] %v1562_v10 }
 0x1da   : > { %v1745_v45 = vadd.f32 %v1744_v13, %v3554_v32  ;;  %1846 = vst [vmem:[%s3360_s12 + $0x1b0] sm:$0xff] %v1656_v16 }
 0x1db   : > { %1603 = vmatmul.bf16.gmra.mxu2 %v3330_v61  ;;  %v3614_v61 = vpop.permute.xlu0 %1208  ;;  %v3655_v58 = vpop.permute.xlu1 %1228 }
 0x1dc   : > { %1847 = vst [vmem:[%s3360_s12 + $0x1b8] sm:$0xff] %v1745_v45  ;;  %v1487_v24 = vpop.f32.mrf.mxu3 }
 0x1dd   : > { %v1488_v27 = vadd.f32 %v1487_v24, %v3601_v12 }
 0x1de   : > { %v1564_v2 = vpop.f32.mrf.mxu2  ;;  %v1658_v56 = vpop.f32.mrf.mxu0 }
 0x1df   : > { %1860 = vst [vmem:[%s3360_s12 + $0x220] sm:$0xff] %v1488_v27  ;;  %v1565_v9 = vadd.f32 %v1564_v2, %v3541_v29  ;;  %v1659_v25 = vadd.f32 %v1658_v56, %v3568_v22 }
 0x1e1   : > { %v1747_v26 = vpop.f32.mrf.mxu1  ;;  %1841 = vst [vmem:[%s3360_s12 + $0x188] sm:$0xff] %v1565_v9  ;;  %1697 = vmatmul.bf16.gmra.mxu0 %v3346_v17 }
 0x1e2   : > { %v1748_v59 = vadd.f32 %v1747_v26, %v3568_v22  ;;  %1850 = vst [vmem:[%s3360_s12 + $0x1d0] sm:$0xff] %v1659_v25 }
 0x1e3   : > { %v3645_v18 = vpop.permute.xlu0 %1223 }
 0x1e4   : > { %1786 = vmatmul.bf16.gmra.mxu1 %v3346_v17  ;;  %1851 = vst [vmem:[%s3360_s12 + $0x1d8] sm:$0xff] %v1748_v59  ;;  %v1490_v19 = vpop.f32.mrf.mxu3 }
 0x1e5   : > { %v1491_v15 = vadd.f32 %v1490_v19, %v3614_v61 }
 0x1e6   : > { %v1566_v30 = vpop.f32.mrf.mxu2  ;;  %v1660_v33 = vpop.f32.mrf.mxu0 }
 0x1e7   : > { %1864 = vst [vmem:[%s3360_s12 + $0x240] sm:$0xff] %v1491_v15  ;;  %v1567_v21 = vadd.f32 %v1566_v30, %v3554_v32  ;;  %v1661_v36 = vadd.f32 %v1660_v33, %v3578_v62 }
 0x1e9   : > { %v1749_v28 = vpop.f32.mrf.mxu1  ;;  %1845 = vst [vmem:[%s3360_s12 + $0x1a8] sm:$0xff] %v1567_v21 }
 0x1ea   : > { %v1750_v29 = vadd.f32 %v1749_v28, %v3578_v62  ;;  %1854 = vst [vmem:[%s3360_s12 + $0x1f0] sm:$0xff] %v1661_v36 }
 0x1eb   : > { %1608 = vmatmul.bf16.gmra.mxu2 %v3346_v17  ;;  %v3635_v17 = vpop.permute.xlu2 %1218  ;;  %v3675_v45 = vpop.permute.xlu0 %1238 }
 0x1ec   : > { %1855 = vst [vmem:[%s3360_s12 + $0x1f8] sm:$0xff] %v1750_v29  ;;  %v1492_v11 = vpop.f32.mrf.mxu3 }
 0x1ed   : > { %v1493_v37 = vadd.f32 %v1492_v11, %v3624_v4 }
 0x1ee   : > { %v1569_v38 = vpop.f32.mrf.mxu2  ;;  %v1663_v39 = vpop.f32.mrf.mxu0 }
 0x1ef   : > { %1868 = vst [vmem:[%s3360_s12 + $0x260] sm:$0xff] %v1493_v37  ;;  %v1570_v40 = vadd.f32 %v1569_v38, %v3568_v22  ;;  %v1664_v43 = vadd.f32 %v1663_v39, %v3591_v14 }
 0x1f1   : > { %v1752_v23 = vpop.f32.mrf.mxu1  ;;  %1849 = vst [vmem:[%s3360_s12 + $0x1c8] sm:$0xff] %v1570_v40 }
 0x1f2   : > { %v1753_v44 = vadd.f32 %v1752_v23, %v3591_v14  ;;  %1858 = vst [vmem:[%s3360_s12 + $0x210] sm:$0xff] %v1664_v43  ;;  %v3686_v59 = vpop.permute.xlu1 %1243 }
 0x1f3   : > { %v3665_v5 = vpop.permute.xlu2 %1233 }
 0x1f4   : > { %1859 = vst [vmem:[%s3360_s12 + $0x218] sm:$0xff] %v1753_v44  ;;  %v1495_v32 = vpop.f32.mrf.mxu3 }
 0x1f5   : > { %v1496_v41 = vadd.f32 %v1495_v32, %v3635_v17 }
 0x1f6   : > { %v1571_v46 = vpop.f32.mrf.mxu2  ;;  %v1665_v47 = vpop.f32.mrf.mxu0 }
 0x1f7   : > { %1872 = vst [vmem:[%s3360_s12 + $0x280] sm:$0xff] %v1496_v41  ;;  %v1572_v35 = vadd.f32 %v1571_v46, %v3578_v62  ;;  %v1666_v48 = vadd.f32 %v1665_v47, %v3601_v12 }
 0x1f9   : > { %v1754_v34 = vpop.f32.mrf.mxu1  ;;  %1853 = vst [vmem:[%s3360_s12 + $0x1e8] sm:$0xff] %v1572_v35 }
 0x1fa   : > { %v1755_v49 = vadd.f32 %v1754_v34, %v3601_v12  ;;  %1862 = vst [vmem:[%s3360_s12 + $0x230] sm:$0xff] %v1666_v48  ;;  %v3706_v44 = vpop.permute.xlu0 %1253 }
 0x1fb   : > { %v3695_v29 = vpop.permute.xlu2 %1248 }
 0x1fc   : > { %1863 = vst [vmem:[%s3360_s12 + $0x238] sm:$0xff] %v1755_v49  ;;  %v1497_v22 = vpop.f32.mrf.mxu3  ;;  %v3716_v49 = vpop.permute.xlu1 %1258 }
 0x1fd   : > { %v1498_v53 = vadd.f32 %v1497_v22, %v3645_v18 }
 0x1fe   : > { %v1574_v54 = vpop.f32.mrf.mxu2  ;;  %v1668_v42 = vpop.f32.mrf.mxu0 }
 0x1ff   : > { %1876 = vst [vmem:[%s3360_s12 + $0x2a0] sm:$0xff] %v1498_v53  ;;  %v1575_v20 = vadd.f32 %v1574_v54, %v3591_v14  ;;  %v1669_v50 = vadd.f32 %v1668_v42, %v3614_v61 }
 0x201   : > { %v1757_v55 = vpop.f32.mrf.mxu1  ;;  %1857 = vst [vmem:[%s3360_s12 + $0x208] sm:$0xff] %v1575_v20 }
 0x202   : > { %v1758_v57 = vadd.f32 %v1757_v55, %v3614_v61  ;;  %1866 = vst [vmem:[%s3360_s12 + $0x250] sm:$0xff] %v1669_v50 }
 0x204   : > { %1867 = vst [vmem:[%s3360_s12 + $0x258] sm:$0xff] %v1758_v57  ;;  %v1500_v62 = vpop.f32.mrf.mxu3 }
 0x205   : > { %v1501_v63 = vadd.f32 %v1500_v62, %v3655_v58 }
 0x206   : > { %v1576_v60 = vpop.f32.mrf.mxu2  ;;  %v1670_v52 = vpop.f32.mrf.mxu0 }
 0x207   : > { %1880 = vst [vmem:[%s3360_s12 + $0x2c0] sm:$0xff] %v1501_v63  ;;  %v1577_v0 = vadd.f32 %v1576_v60, %v3601_v12  ;;  %v1671_v1 = vadd.f32 %v1670_v52, %v3624_v4 }
 0x209   : > { %v1759_v31 = vpop.f32.mrf.mxu1  ;;  %1861 = vst [vmem:[%s3360_s12 + $0x228] sm:$0xff] %v1577_v0 }
 0x20a   : > { %v1760_v3 = vadd.f32 %v1759_v31, %v3624_v4  ;;  %1870 = vst [vmem:[%s3360_s12 + $0x270] sm:$0xff] %v1671_v1  ;;  %v1264_v57 = vpop.permute.xlu2 %1263 }
 0x20c   : > { %1871 = vst [vmem:[%s3360_s12 + $0x278] sm:$0xff] %v1760_v3  ;;  %v1502_v14 = vpop.f32.mrf.mxu3  ;;  %v1269_v3 = vpop.permute.xlu0 %1268 }
 0x20d   : > { %v1503_v51 = vadd.f32 %v1502_v14, %v3665_v5 }
 0x20e   : > { %v1579_v6 = vpop.f32.mrf.mxu2  ;;  %v1673_v7 = vpop.f32.mrf.mxu0 }
 0x20f   : > { %1884 = vst [vmem:[%s3360_s12 + $0x2e0] sm:$0xff] %v1503_v51  ;;  %v1580_v8 = vadd.f32 %v1579_v6, %v3614_v61  ;;  %v1674_v10 = vadd.f32 %v1673_v7, %v3635_v17 }
 0x211   : > { %v1762_v16 = vpop.f32.mrf.mxu1  ;;  %1865 = vst [vmem:[%s3360_s12 + $0x248] sm:$0xff] %v1580_v8 }
 0x212   : > { %v1763_v13 = vadd.f32 %v1762_v16, %v3635_v17  ;;  %1874 = vst [vmem:[%s3360_s12 + $0x290] sm:$0xff] %v1674_v10 }
 0x214   : > { %1875 = vst [vmem:[%s3360_s12 + $0x298] sm:$0xff] %v1763_v13  ;;  %v1505_v12 = vpop.f32.mrf.mxu3  ;;  %v1274_v13 = vpop.permute.xlu1 %1273 }
 0x215   : > { %v1506_v24 = vadd.f32 %v1505_v12, %v3675_v45 }
 0x216   : > { %v1581_v27 = vpop.f32.mrf.mxu2  ;;  %v1675_v2 = vpop.f32.mrf.mxu0 }
 0x217   : > { %1888 = vst [vmem:[%s3360_s12 + $0x300] sm:$0xff] %v1506_v24  ;;  %v1582_v56 = vadd.f32 %v1581_v27, %v3624_v4  ;;  %v1676_v9 = vadd.f32 %v1675_v2, %v3645_v18 }
 0x219   : > { %v1764_v25 = vpop.f32.mrf.mxu1  ;;  %1869 = vst [vmem:[%s3360_s12 + $0x268] sm:$0xff] %v1582_v56 }
 0x21a   : > { %v1765_v26 = vadd.f32 %v1764_v25, %v3645_v18  ;;  %1878 = vst [vmem:[%s3360_s12 + $0x2b0] sm:$0xff] %v1676_v9 }
 0x21c   : > { %1879 = vst [vmem:[%s3360_s12 + $0x2b8] sm:$0xff] %v1765_v26  ;;  %v1507_v61 = vpop.f32.mrf.mxu3 }
 0x21d   : > { %v1508_v19 = vadd.f32 %v1507_v61, %v3686_v59 }
 0x21e   : > { %v1584_v15 = vpop.f32.mrf.mxu2  ;;  %v1678_v30 = vpop.f32.mrf.mxu0 }
 0x21f   : > { %1892 = vst [vmem:[%s3360_s12 + $0x320] sm:$0xff] %v1508_v19  ;;  %v1585_v33 = vadd.f32 %v1584_v15, %v3635_v17  ;;  %v1679_v21 = vadd.f32 %v1678_v30, %v3655_v58 }
 0x221   : > { %v1767_v36 = vpop.f32.mrf.mxu1  ;;  %1873 = vst [vmem:[%s3360_s12 + $0x288] sm:$0xff] %v1585_v33 }
 0x222   : > { %v1768_v28 = vadd.f32 %v1767_v36, %v3655_v58  ;;  %1882 = vst [vmem:[%s3360_s12 + $0x2d0] sm:$0xff] %v1679_v21 }
 0x224   : > { %1883 = vst [vmem:[%s3360_s12 + $0x2d8] sm:$0xff] %v1768_v28  ;;  %v1510_v4 = vpop.f32.mrf.mxu3 }
 0x225   : > { %v1511_v11 = vadd.f32 %v1510_v4, %v3695_v29 }
 0x226   : > { %v1586_v37 = vpop.f32.mrf.mxu2  ;;  %v1680_v38 = vpop.f32.mrf.mxu0 }
 0x227   : > { %1896 = vst [vmem:[%s3360_s12 + $0x340] sm:$0xff] %v1511_v11  ;;  %v1587_v39 = vadd.f32 %v1586_v37, %v3645_v18  ;;  %v1681_v40 = vadd.f32 %v1680_v38, %v3665_v5 }
 0x229   : > { %v1769_v43 = vpop.f32.mrf.mxu1  ;;  %1877 = vst [vmem:[%s3360_s12 + $0x2a8] sm:$0xff] %v1587_v39 }
 0x22a   : > { %v1770_v23 = vadd.f32 %v1769_v43, %v3665_v5  ;;  %1886 = vst [vmem:[%s3360_s12 + $0x2f0] sm:$0xff] %v1681_v40 }
 0x22c   : > { %1887 = vst [vmem:[%s3360_s12 + $0x2f8] sm:$0xff] %v1770_v23  ;;  %v1512_v17 = vpop.f32.mrf.mxu3 }
 0x22d   : > { %v1513_v32 = vadd.f32 %v1512_v17, %v3706_v44 }
 0x22e   : > { %v1589_v41 = vpop.f32.mrf.mxu2  ;;  %v1683_v46 = vpop.f32.mrf.mxu0 }
 0x22f   : > { %1900 = vst [vmem:[%s3360_s12 + $0x360] sm:$0xff] %v1513_v32  ;;  %v1590_v47 = vadd.f32 %v1589_v41, %v3655_v58  ;;  %v1684_v35 = vadd.f32 %v1683_v46, %v3675_v45 }
 0x231   : > { %v1772_v48 = vpop.f32.mrf.mxu1  ;;  %1881 = vst [vmem:[%s3360_s12 + $0x2c8] sm:$0xff] %v1590_v47 }
 0x232   : > { %v1773_v34 = vadd.f32 %v1772_v48, %v3675_v45  ;;  %1890 = vst [vmem:[%s3360_s12 + $0x310] sm:$0xff] %v1684_v35 }
 0x234   : > { %1891 = vst [vmem:[%s3360_s12 + $0x318] sm:$0xff] %v1773_v34  ;;  %v1515_v18 = vpop.f32.mrf.mxu3 }
 0x235   : > { %v1516_v22 = vadd.f32 %v1515_v18, %v3716_v49 }
 0x236   : > { %v1591_v53 = vpop.f32.mrf.mxu2  ;;  %v1685_v54 = vpop.f32.mrf.mxu0 }
 0x237   : > { %1904 = vst [vmem:[%s3360_s12 + $0x380] sm:$0xff] %v1516_v22  ;;  %v1592_v42 = vadd.f32 %v1591_v53, %v3665_v5  ;;  %v1686_v20 = vadd.f32 %v1685_v54, %v3686_v59 }
 0x239   : > { %v1774_v50 = vpop.f32.mrf.mxu1  ;;  %1885 = vst [vmem:[%s3360_s12 + $0x2e8] sm:$0xff] %v1592_v42 }
 0x23a   : > { %v1775_v55 = vadd.f32 %v1774_v50, %v3686_v59  ;;  %1894 = vst [vmem:[%s3360_s12 + $0x330] sm:$0xff] %v1686_v20 }
 0x23c   : > { %1895 = vst [vmem:[%s3360_s12 + $0x338] sm:$0xff] %v1775_v55  ;;  %v1517_v58 = vpop.f32.mrf.mxu3 }
 0x23d   : > { %v1518_v62 = vadd.f32 %v1517_v58, %v1264_v57 }
 0x23e   : > { %v1594_v63 = vpop.f32.mrf.mxu2  ;;  %v1688_v60 = vpop.f32.mrf.mxu0 }
 0x23f   : > { %1908 = vst [vmem:[%s3360_s12 + $0x3a0] sm:$0xff] %v1518_v62  ;;  %v1595_v52 = vadd.f32 %v1594_v63, %v3675_v45  ;;  %v1689_v0 = vadd.f32 %v1688_v60, %v3695_v29 }
 0x241   : > { %v1777_v1 = vpop.f32.mrf.mxu1  ;;  %1889 = vst [vmem:[%s3360_s12 + $0x308] sm:$0xff] %v1595_v52 }
 0x242   : > { %v1778_v31 = vadd.f32 %v1777_v1, %v3695_v29  ;;  %1898 = vst [vmem:[%s3360_s12 + $0x350] sm:$0xff] %v1689_v0 }
 0x244   : > { %1899 = vst [vmem:[%s3360_s12 + $0x358] sm:$0xff] %v1778_v31  ;;  %v1520_v5 = vpop.f32.mrf.mxu3 }
 0x245   : > { %v1521_v14 = vadd.f32 %v1520_v5, %v1269_v3 }
 0x246   : > { %v1596_v51 = vpop.f32.mrf.mxu2  ;;  %v1690_v6 = vpop.f32.mrf.mxu0 }
 0x247   : > { %1912 = vst [vmem:[%s3360_s12 + $0x3c0] sm:$0xff] %v1521_v14  ;;  %v1597_v7 = vadd.f32 %v1596_v51, %v3686_v59  ;;  %v1691_v8 = vadd.f32 %v1690_v6, %v3706_v44 }
 0x249   : > { %v1779_v10 = vpop.f32.mrf.mxu1  ;;  %1893 = vst [vmem:[%s3360_s12 + $0x328] sm:$0xff] %v1597_v7 }
 0x24a   : > { %v1780_v16 = vadd.f32 %v1779_v10, %v3706_v44  ;;  %1902 = vst [vmem:[%s3360_s12 + $0x370] sm:$0xff] %v1691_v8 }
 0x24c   : > { %1903 = vst [vmem:[%s3360_s12 + $0x378] sm:$0xff] %v1780_v16  ;;  %v1522_v45 = vpop.f32.mrf.mxu3 }
 0x24d   : > { %v1523_v12 = vadd.f32 %v1522_v45, %v1274_v13 }
 0x24e   : > { %v1599_v24 = vpop.f32.mrf.mxu2  ;;  %v1693_v27 = vpop.f32.mrf.mxu0 }
 0x24f   : > { %1916 = vst [vmem:[%s3360_s12 + $0x3e0] sm:$0xff] %v1523_v12  ;;  %v1600_v2 = vadd.f32 %v1599_v24, %v3695_v29  ;;  %v1694_v56 = vadd.f32 %v1693_v27, %v3716_v49 }
 0x251   : > { %v1782_v9 = vpop.f32.mrf.mxu1  ;;  %1897 = vst [vmem:[%s3360_s12 + $0x348] sm:$0xff] %v1600_v2 }
 0x252   : > { %v1783_v25 = vadd.f32 %v1782_v9, %v3716_v49  ;;  %1906 = vst [vmem:[%s3360_s12 + $0x390] sm:$0xff] %v1694_v56 }
 0x254   : > { %1907 = vst [vmem:[%s3360_s12 + $0x398] sm:$0xff] %v1783_v25 }
 0x256   : > { %v1601_v26 = vpop.f32.mrf.mxu2  ;;  %v1695_v59 = vpop.f32.mrf.mxu0 }
 0x257   : > { %v1602_v61 = vadd.f32 %v1601_v26, %v3706_v44  ;;  %v1696_v19 = vadd.f32 %v1695_v59, %v1264_v57 }
 0x259   : > { %v1784_v15 = vpop.f32.mrf.mxu1  ;;  %1901 = vst [vmem:[%s3360_s12 + $0x368] sm:$0xff] %v1602_v61 }
 0x25a   : > { %v1785_v30 = vadd.f32 %v1784_v15, %v1264_v57  ;;  %1910 = vst [vmem:[%s3360_s12 + $0x3b0] sm:$0xff] %v1696_v19 }
 0x25c   : > { %1911 = vst [vmem:[%s3360_s12 + $0x3b8] sm:$0xff] %v1785_v30 }
 0x25e   : > { %v1604_v33 = vpop.f32.mrf.mxu2  ;;  %v1698_v21 = vpop.f32.mrf.mxu0 }
 0x25f   : > { %v1605_v36 = vadd.f32 %v1604_v33, %v3716_v49  ;;  %v1699_v28 = vadd.f32 %v1698_v21, %v1269_v3 }
 0x261   : > { %v1787_v29 = vpop.f32.mrf.mxu1  ;;  %1905 = vst [vmem:[%s3360_s12 + $0x388] sm:$0xff] %v1605_v36 }
 0x262   : > { %v1788_v4 = vadd.f32 %v1787_v29, %v1269_v3  ;;  %1914 = vst [vmem:[%s3360_s12 + $0x3d0] sm:$0xff] %v1699_v28 }
 0x264   : > { %1915 = vst [vmem:[%s3360_s12 + $0x3d8] sm:$0xff] %v1788_v4 }
 0x266   : > { %v1606_v11 = vpop.f32.mrf.mxu2  ;;  %v1700_v37 = vpop.f32.mrf.mxu0 }
 0x267   : > { %v1607_v38 = vadd.f32 %v1606_v11, %v1264_v57  ;;  %v1701_v39 = vadd.f32 %v1700_v37, %v1274_v13 }
 0x269   : > { %v1789_v40 = vpop.f32.mrf.mxu1  ;;  %1909 = vst [vmem:[%s3360_s12 + $0x3a8] sm:$0xff] %v1607_v38 }
 0x26a   : > { %v1790_v43 = vadd.f32 %v1789_v40, %v1274_v13  ;;  %1918 = vst [vmem:[%s3360_s12 + $0x3f0] sm:$0xff] %v1701_v39 }
 0x26c   : > { %1919 = vst [vmem:[%s3360_s12 + $0x3f8] sm:$0xff] %v1790_v43 }
 0x26e   : > { %v1609_v23 = vpop.f32.mrf.mxu2 }
 0x26f   : > { %v1610_v44 = vadd.f32 %v1609_v23, %v1269_v3 }
 0x271   : > { %1913 = vst [vmem:[%s3360_s12 + $0x3c8] sm:$0xff] %v1610_v44 }
 0x276   : > { %v1611_v17 = vpop.f32.mrf.mxu2 }
 0x277   : > { %v1612_v32 = vadd.f32 %v1611_v17, %v1274_v13 }
 0x279   : > { %1917 = vst [vmem:[%s3360_s12 + $0x3e8] sm:$0xff] %v1612_v32 }
 0x27a PF: > { %s16_s23 = sadd.s32 1, %s2558_s23   ;;  %s3776_s21 = smov %s2554_s22 }
 0x27b   : > { %p13_p5 = scmp.ge.s32.totalorder %s16_s23, 4   ;;  %s3777_s22 = smov %s3779_s24 }
 0x27d   :  { %15 = sbr.rel (!%p13_p5) target bundleno = 2 (0x2), region = 80 }

</bundles_post_ra>
